<compile_context>
chip_gen: v5e
topology: v5e:2x2
jax: 0.10.0
libtpu: 0.0.40
codegen_flags: <defaults>
</compile_context>

<pallas_src>
import jax
import jax.numpy as jnp
from jax.experimental import pallas as pl
from jax.experimental.pallas import tpu as pltpu  # noqa: F401  (TPU backend)

# Model hyper-parameters (small, consistent with the module's structure)
VOCAB = 64            # vocab_size
T = 8                 # context_len == sequence length
D = 32                # d_model
H = 4                 # num_heads
HD = D // H           # head dim
L = 2                 # num_layers
FF = 4 * D            # dim_feedforward
B = 2                 # batch
BT = B * T            # flattened (batch, seq) rows
VPAD = 128            # vocab padded to a full 128-lane slab for the output store
EPS = 1e-5            # PyTorch LayerNorm default eps
NEG = -1e9            # additive mask value (PyTorch uses -inf; -1e9 avoids NaN)

# Weight-slab row layout (all weights pre-transposed to [in, out] on the host)
ROWS_PER_LAYER = D + D + FF            # attn(32) + ff1(32) + ff2(128) = 192
W_OUT_BASE = L * ROWS_PER_LAYER        # 384: final vocab projection rows
W_ROWS = W_OUT_BASE + D                # 416 total rows x 128 lanes (bf16)

# Scores are O(1) after 1/sqrt(HD) scaling and exp(-1e9) underflows to 0, so the
# max-subtraction is skipped (flip to True if inputs may be unbounded).
STABLE_SOFTMAX = False


def _layer_norm(v, w, b):
    mu = jnp.mean(v, axis=-1, keepdims=True)
    var = jnp.mean(jnp.square(v - mu), axis=-1, keepdims=True)
    return (v - mu) * jax.lax.rsqrt(var + EPS) * w + b


def bert4rec_kernel(x_ref, mask_ref, w_ref, b_ref, logits_ref):
    h = x_ref[...]                      # (BT, D) f32: item_emb + pos_emb
    mask = mask_ref[...]                # (BT, BT) f32: block-diag + key-padding
    scale = 1.0 / float(HD) ** 0.5

    for l in range(L):                  # post-norm TransformerEncoderLayer x L
        base = l * ROWS_PER_LAYER
        bl = b_ref[l]                   # (8, 128) per-layer bias / LN slab

        # ---- fused QKV projection (one MXU push; lanes 96:128 carry h@Wo,
        #      which is unused garbage and costs nothing extra) ---------------
        wattn = w_ref[base:base + D, :]                         # (D, 128) bf16
        qkv = jnp.dot(h.astype(jnp.bfloat16), wattn,
                      preferred_element_type=jnp.float32) + bl[0:1, :]  # (BT,128)

        # ---- per-head attention: batch folded into BT, mask handles padding
        #      and batch separation --------------------------------------------
        o_heads = []
        for hh in range(H):
            q = qkv[:, hh * HD:(hh + 1) * HD] * scale                    # (BT, HD)
            k = qkv[:, D + hh * HD:D + (hh + 1) * HD]
            v = qkv[:, 2 * D + hh * HD:2 * D + (hh + 1) * HD]
            s = jnp.einsum('qd,kd->qk', q.astype(jnp.bfloat16),
                           k.astype(jnp.bfloat16),
                           preferred_element_type=jnp.float32) + mask    # (BT, BT)
            if STABLE_SOFTMAX:
                s = s - jnp.max(s, axis=-1, keepdims=True)
            p = jnp.exp(s)
            p = p * pl.reciprocal(jnp.sum(p, axis=-1, keepdims=True), approx=True)
            o_heads.append(jnp.dot(p.astype(jnp.bfloat16), v.astype(jnp.bfloat16),
                                   preferred_element_type=jnp.float32))  # (BT, HD)

        # ---- single out-projection for all heads -----------------------------
        o_cat = jnp.concatenate(o_heads, axis=-1)                        # (BT, D)
        attn = jnp.dot(o_cat.astype(jnp.bfloat16), wattn[:, 3 * D:4 * D],
                       preferred_element_type=jnp.float32) + bl[0:1, 3 * D:4 * D]
        h = _layer_norm(h + attn, bl[3:4, 0:D], bl[4:5, 0:D])

        # ---- feed-forward -----------------------------------------------------
        ff = jnp.dot(h.astype(jnp.bfloat16), w_ref[base + D:base + 2 * D, :],
                     preferred_element_type=jnp.float32) + bl[1:2, :]    # (BT, FF)
        ff = jnp.maximum(ff, 0.0)                                        # relu
        ff2 = jnp.dot(ff.astype(jnp.bfloat16),
                      w_ref[base + 2 * D:base + 2 * D + FF, :],
                      preferred_element_type=jnp.float32)[:, 0:D] + bl[2:3, 0:D]
        h = _layer_norm(h + ff2, bl[5:6, 0:D], bl[6:7, 0:D])

    # ---- final LayerNorm + lane-dense (VPAD=128) vocab projection -------------
    bf = b_ref[L]
    h = _layer_norm(h, bf[0:1, 0:D], bf[1:2, 0:D])
    logits_ref[...] = jnp.dot(h.astype(jnp.bfloat16),
                              w_ref[W_OUT_BASE:W_OUT_BASE + D, :],
                              preferred_element_type=jnp.float32) + bf[2:3, :]


def pack_params(params):
    """One-time host-side packing of all weights/biases into 2 lane-dense slabs.

    Called once (outside the per-call path); the forward pass only ever sees the
    two packed slabs.
    """
    wslab = jnp.zeros((W_ROWS, VPAD), jnp.float32)
    bslab = jnp.zeros((L + 1, 8, VPAD), jnp.float32)
    for l in range(L):
        base = l * ROWS_PER_LAYER
        # attention rows: lanes 0:96 = Wq|Wk|Wv, lanes 96:128 = Wo   ([in, out])
        wslab = wslab.at[base:base + D, 0:3 * D].set(params["ipw"][l].T)
        wslab = wslab.at[base:base + D, 3 * D:4 * D].set(params["opw"][l].T)
        wslab = wslab.at[base + D:base + 2 * D, :].set(params["ffw1"][l].T)       # (D, FF)
        wslab = wslab.at[base + 2 * D:base + 2 * D + FF, 0:D].set(params["ffw2"][l].T)
        # bias / LN rows
        bslab = bslab.at[l, 0, 0:3 * D].set(params["ipb"][l])
        bslab = bslab.at[l, 0, 3 * D:4 * D].set(params["opb"][l])
        bslab = bslab.at[l, 1, :].set(params["ffb1"][l])
        bslab = bslab.at[l, 2, 0:D].set(params["ffb2"][l])
        bslab = bslab.at[l, 3, 0:D].set(params["ln1w"][l])
        bslab = bslab.at[l, 4, 0:D].set(params["ln1b"][l])
        bslab = bslab.at[l, 5, 0:D].set(params["ln2w"][l])
        bslab = bslab.at[l, 6, 0:D].set(params["ln2b"][l])
    # final LayerNorm + vocab projection (padded to 128 lanes)
    wslab = wslab.at[W_OUT_BASE:W_OUT_BASE + D, 0:VOCAB].set(params["outw"].T)
    bslab = bslab.at[L, 0, 0:D].set(params["lnw"].reshape(-1))
    bslab = bslab.at[L, 1, 0:D].set(params["lnb"].reshape(-1))
    bslab = bslab.at[L, 2, 0:VOCAB].set(params["outb"].reshape(-1))
    return wslab.astype(jnp.bfloat16), bslab


@jax.jit
def bert4rec_forward(input_seq, item_emb, pos_emb, wslab, bslab):
    # Embeddings, flattened to one (B*T, D) activation slab.
    x = (item_emb[input_seq] + pos_emb[None, :, :]).reshape(BT, D).astype(jnp.float32)

    # Additive attention mask: block-diagonal across batches + key-padding bias.
    flat_ids = input_seq.reshape(-1)
    row_b = jnp.arange(BT, dtype=jnp.int32) // T
    valid = (row_b[:, None] == row_b[None, :]) & (flat_ids != 0)[None, :]
    mask = jnp.where(valid, 0.0, NEG).astype(jnp.float32)                # (BT, BT)

    # Single kernel invocation, everything resident in VMEM (no grid).
    logits_pad = pl.pallas_call(
        bert4rec_kernel,
        out_shape=jax.ShapeDtypeStruct((BT, VPAD), jnp.float32),
    )(x, mask, wslab, bslab)

    return logits_pad.reshape(B, T, VPAD)[:, :, :VOCAB]


def init_params(key):
    ks = jax.random.split(key, 12)

    def n(k, shape, s=0.02):
        return (s * jax.random.normal(k, shape)).astype(jnp.float32)

    item_emb = n(ks[0], (VOCAB, D)).at[0].set(0.0)   # padding_idx=0 -> zero row
    return dict(
        item_emb=item_emb,
        pos_emb=n(ks[1], (T, D)),
        ipw=n(ks[2], (L, 3 * D, D)), ipb=n(ks[3], (L, 3 * D)),
        opw=n(ks[4], (L, D, D)),     opb=n(ks[5], (L, D)),
        ln1w=jnp.ones((L, D), jnp.float32), ln1b=jnp.zeros((L, D), jnp.float32),
        ln2w=jnp.ones((L, D), jnp.float32), ln2b=jnp.zeros((L, D), jnp.float32),
        ffw1=n(ks[6], (L, FF, D)),   ffb1=n(ks[7], (L, FF)),
        ffw2=n(ks[8], (L, D, FF)),   ffb2=n(ks[9], (L, D)),
        lnw=jnp.ones((1, D), jnp.float32), lnb=jnp.zeros((1, D), jnp.float32),
        outw=n(ks[10], (VOCAB, D)),  outb=n(ks[11], (1, VOCAB)),
    )


if __name__ == "__main__":
    key = jax.random.PRNGKey(0)
    pkey, dkey = jax.random.split(key)
    params = init_params(pkey)

    # One-time host-side packing (hoisted out of the steady-state call path).
    wslab, bslab = jax.block_until_ready(pack_params(params))

    # item IDs in [1, VOCAB); last two positions are PAD (id 0)
    input_seq = jax.random.randint(dkey, (B, T), 1, VOCAB, dtype=jnp.int32)
    input_seq = input_seq.at[:, -2:].set(0)

    logits = bert4rec_forward(input_seq, params["item_emb"], params["pos_emb"],
                              wslab, bslab)
    jax.block_until_ready(logits)
    assert logits.shape == (B, T, VOCAB)
    assert bool(jnp.all(jnp.isfinite(logits)))
    print("KERNEL_OK")
</pallas_src>

<mosaic_0001>
module attributes {stable_mosaic.version = 11 : i64} {
  func.func @bert4rec_kernel(%arg0: memref<16x32xf32, #tpu.memory_space<vmem>>, %arg1: memref<16x16xf32, #tpu.memory_space<vmem>>, %arg2: memref<416x128xbf16, #tpu.memory_space<vmem>>, %arg3: memref<3x8x128xf32, #tpu.memory_space<vmem>>, %arg4: memref<16x128xf32, #tpu.memory_space<vmem>>) attributes {dimension_semantics = [], scalar_prefetch = 0 : i64, scratch_operands = 0 : i64, tpu.core_type = #tpu.core_type<tc>} {
    %c0 = arith.constant 0 : index
    %c0_0 = arith.constant 0 : index
    %0 = vector.load %arg0[%c0, %c0_0] : memref<16x32xf32, #tpu.memory_space<vmem>>, vector<16x32xf32>
    %c0_1 = arith.constant 0 : index
    %c0_2 = arith.constant 0 : index
    %1 = vector.load %arg1[%c0_1, %c0_2] : memref<16x16xf32, #tpu.memory_space<vmem>>, vector<16x16xf32>
    %c0_3 = arith.constant 0 : index
    %c0_4 = arith.constant 0 : index
    %c0_5 = arith.constant 0 : index
    %2 = vector.load %arg3[%c0_3, %c0_4, %c0_5] : memref<3x8x128xf32, #tpu.memory_space<vmem>>, vector<1x8x128xf32>
    %3 = vector.shape_cast %2 : vector<1x8x128xf32> to vector<8x128xf32>
    %c0_6 = arith.constant 0 : index
    %c0_7 = arith.constant 0 : index
    %4 = vector.load %arg2[%c0_6, %c0_7] : memref<416x128xbf16, #tpu.memory_space<vmem>>, vector<32x128xbf16>
    %5 = arith.truncf %0 : vector<16x32xf32> to vector<16x32xbf16>
    %cst = arith.constant dense<0.000000e+00> : vector<16x128xf32>
    %6 = tpu.matmul %5, %4, %cst {dimension_numbers = #tpu.dot_dimension_numbers<[1], [0], [0], [1], [0, 0, 1, 1], [], []>} : vector<16x32xbf16>, vector<32x128xbf16>, vector<16x128xf32> -> vector<16x128xf32>
    %7 = vector.extract_strided_slice %3 {offsets = [0, 0], sizes = [1, 128], strides = [1, 1]} : vector<8x128xf32> to vector<1x128xf32>
    %8 = vector.broadcast %7 : vector<1x128xf32> to vector<16x128xf32>
    %9 = arith.addf %6, %8 : vector<16x128xf32>
    %10 = vector.extract_strided_slice %9 {offsets = [0, 0], sizes = [16, 8], strides = [1, 1]} : vector<16x128xf32> to vector<16x8xf32>
    %cst_8 = arith.constant 0.353553385 : f32
    %11 = vector.broadcast %cst_8 : f32 to vector<16x8xf32>
    %12 = arith.mulf %10, %11 : vector<16x8xf32>
    %13 = vector.extract_strided_slice %9 {offsets = [0, 32], sizes = [16, 8], strides = [1, 1]} : vector<16x128xf32> to vector<16x8xf32>
    %14 = vector.extract_strided_slice %9 {offsets = [0, 64], sizes = [16, 8], strides = [1, 1]} : vector<16x128xf32> to vector<16x8xf32>
    %15 = arith.truncf %12 : vector<16x8xf32> to vector<16x8xbf16>
    %16 = arith.truncf %13 : vector<16x8xf32> to vector<16x8xbf16>
    "tpu.trace_start"() <{level = 10 : i32, message = "qd,kd->qk"}> : () -> ()
    %cst_9 = arith.constant dense<0.000000e+00> : vector<16x16xf32>
    %17 = tpu.matmul %15, %16, %cst_9 {dimension_numbers = #tpu.dot_dimension_numbers<[1], [1], [0], [0], [0, 0, 1, 0], [], []>} : vector<16x8xbf16>, vector<16x8xbf16>, vector<16x16xf32> -> vector<16x16xf32>
    "tpu.trace_stop"() : () -> ()
    %18 = arith.addf %17, %1 : vector<16x16xf32>
    %19 = math.exp %18 : vector<16x16xf32>
    %cst_10 = arith.constant dense<0.000000e+00> : vector<16xf32>
    %20 = vector.multi_reduction <add>, %19, %cst_10 [1] : vector<16x16xf32> to vector<16xf32>
    %21 = vector.shape_cast %20 : vector<16xf32> to vector<16x1xf32>
    %22 = tpu.reciprocal %21 {approx = true} : vector<16x1xf32> -> vector<16x1xf32>
    %23 = vector.broadcast %22 : vector<16x1xf32> to vector<16x16xf32>
    %24 = arith.mulf %19, %23 : vector<16x16xf32>
    %25 = arith.truncf %24 : vector<16x16xf32> to vector<16x16xbf16>
    %26 = arith.truncf %14 : vector<16x8xf32> to vector<16x8xbf16>
    %cst_11 = arith.constant dense<0.000000e+00> : vector<16x8xf32>
    %27 = tpu.matmul %25, %26, %cst_11 {dimension_numbers = #tpu.dot_dimension_numbers<[1], [0], [0], [1], [0, 0, 1, 1], [], []>} : vector<16x16xbf16>, vector<16x8xbf16>, vector<16x8xf32> -> vector<16x8xf32>
    %28 = vector.extract_strided_slice %9 {offsets = [0, 8], sizes = [16, 8], strides = [1, 1]} : vector<16x128xf32> to vector<16x8xf32>
    %cst_12 = arith.constant 0.353553385 : f32
    %29 = vector.broadcast %cst_12 : f32 to vector<16x8xf32>
    %30 = arith.mulf %28, %29 : vector<16x8xf32>
    %31 = vector.extract_strided_slice %9 {offsets = [0, 40], sizes = [16, 8], strides = [1, 1]} : vector<16x128xf32> to vector<16x8xf32>
    %32 = vector.extract_strided_slice %9 {offsets = [0, 72], sizes = [16, 8], strides = [1, 1]} : vector<16x128xf32> to vector<16x8xf32>
    %33 = arith.truncf %30 : vector<16x8xf32> to vector<16x8xbf16>
    %34 = arith.truncf %31 : vector<16x8xf32> to vector<16x8xbf16>
    "tpu.trace_start"() <{level = 10 : i32, message = "qd,kd->qk"}> : () -> ()
    %cst_13 = arith.constant dense<0.000000e+00> : vector<16x16xf32>
    %35 = tpu.matmul %33, %34, %cst_13 {dimension_numbers = #tpu.dot_dimension_numbers<[1], [1], [0], [0], [0, 0, 1, 0], [], []>} : vector<16x8xbf16>, vector<16x8xbf16>, vector<16x16xf32> -> vector<16x16xf32>
    "tpu.trace_stop"() : () -> ()
    %36 = arith.addf %35, %1 : vector<16x16xf32>
    %37 = math.exp %36 : vector<16x16xf32>
    %cst_14 = arith.constant dense<0.000000e+00> : vector<16xf32>
    %38 = vector.multi_reduction <add>, %37, %cst_14 [1] : vector<16x16xf32> to vector<16xf32>
    %39 = vector.shape_cast %38 : vector<16xf32> to vector<16x1xf32>
    %40 = tpu.reciprocal %39 {approx = true} : vector<16x1xf32> -> vector<16x1xf32>
    %41 = vector.broadcast %40 : vector<16x1xf32> to vector<16x16xf32>
    %42 = arith.mulf %37, %41 : vector<16x16xf32>
    %43 = arith.truncf %42 : vector<16x16xf32> to vector<16x16xbf16>
    %44 = arith.truncf %32 : vector<16x8xf32> to vector<16x8xbf16>
    %cst_15 = arith.constant dense<0.000000e+00> : vector<16x8xf32>
    %45 = tpu.matmul %43, %44, %cst_15 {dimension_numbers = #tpu.dot_dimension_numbers<[1], [0], [0], [1], [0, 0, 1, 1], [], []>} : vector<16x16xbf16>, vector<16x8xbf16>, vector<16x8xf32> -> vector<16x8xf32>
    %46 = vector.extract_strided_slice %9 {offsets = [0, 16], sizes = [16, 8], strides = [1, 1]} : vector<16x128xf32> to vector<16x8xf32>
    %cst_16 = arith.constant 0.353553385 : f32
    %47 = vector.broadcast %cst_16 : f32 to vector<16x8xf32>
    %48 = arith.mulf %46, %47 : vector<16x8xf32>
    %49 = vector.extract_strided_slice %9 {offsets = [0, 48], sizes = [16, 8], strides = [1, 1]} : vector<16x128xf32> to vector<16x8xf32>
    %50 = vector.extract_strided_slice %9 {offsets = [0, 80], sizes = [16, 8], strides = [1, 1]} : vector<16x128xf32> to vector<16x8xf32>
    %51 = arith.truncf %48 : vector<16x8xf32> to vector<16x8xbf16>
    %52 = arith.truncf %49 : vector<16x8xf32> to vector<16x8xbf16>
    "tpu.trace_start"() <{level = 10 : i32, message = "qd,kd->qk"}> : () -> ()
    %cst_17 = arith.constant dense<0.000000e+00> : vector<16x16xf32>
    %53 = tpu.matmul %51, %52, %cst_17 {dimension_numbers = #tpu.dot_dimension_numbers<[1], [1], [0], [0], [0, 0, 1, 0], [], []>} : vector<16x8xbf16>, vector<16x8xbf16>, vector<16x16xf32> -> vector<16x16xf32>
    "tpu.trace_stop"() : () -> ()
    %54 = arith.addf %53, %1 : vector<16x16xf32>
    %55 = math.exp %54 : vector<16x16xf32>
    %cst_18 = arith.constant dense<0.000000e+00> : vector<16xf32>
    %56 = vector.multi_reduction <add>, %55, %cst_18 [1] : vector<16x16xf32> to vector<16xf32>
    %57 = vector.shape_cast %56 : vector<16xf32> to vector<16x1xf32>
    %58 = tpu.reciprocal %57 {approx = true} : vector<16x1xf32> -> vector<16x1xf32>
    %59 = vector.broadcast %58 : vector<16x1xf32> to vector<16x16xf32>
    %60 = arith.mulf %55, %59 : vector<16x16xf32>
    %61 = arith.truncf %60 : vector<16x16xf32> to vector<16x16xbf16>
    %62 = arith.truncf %50 : vector<16x8xf32> to vector<16x8xbf16>
    %cst_19 = arith.constant dense<0.000000e+00> : vector<16x8xf32>
    %63 = tpu.matmul %61, %62, %cst_19 {dimension_numbers = #tpu.dot_dimension_numbers<[1], [0], [0], [1], [0, 0, 1, 1], [], []>} : vector<16x16xbf16>, vector<16x8xbf16>, vector<16x8xf32> -> vector<16x8xf32>
    %64 = vector.extract_strided_slice %9 {offsets = [0, 24], sizes = [16, 8], strides = [1, 1]} : vector<16x128xf32> to vector<16x8xf32>
    %cst_20 = arith.constant 0.353553385 : f32
    %65 = vector.broadcast %cst_20 : f32 to vector<16x8xf32>
    %66 = arith.mulf %64, %65 : vector<16x8xf32>
    %67 = vector.extract_strided_slice %9 {offsets = [0, 56], sizes = [16, 8], strides = [1, 1]} : vector<16x128xf32> to vector<16x8xf32>
    %68 = vector.extract_strided_slice %9 {offsets = [0, 88], sizes = [16, 8], strides = [1, 1]} : vector<16x128xf32> to vector<16x8xf32>
    %69 = arith.truncf %66 : vector<16x8xf32> to vector<16x8xbf16>
    %70 = arith.truncf %67 : vector<16x8xf32> to vector<16x8xbf16>
    "tpu.trace_start"() <{level = 10 : i32, message = "qd,kd->qk"}> : () -> ()
    %cst_21 = arith.constant dense<0.000000e+00> : vector<16x16xf32>
    %71 = tpu.matmul %69, %70, %cst_21 {dimension_numbers = #tpu.dot_dimension_numbers<[1], [1], [0], [0], [0, 0, 1, 0], [], []>} : vector<16x8xbf16>, vector<16x8xbf16>, vector<16x16xf32> -> vector<16x16xf32>
    "tpu.trace_stop"() : () -> ()
    %72 = arith.addf %71, %1 : vector<16x16xf32>
    %73 = math.exp %72 : vector<16x16xf32>
    %cst_22 = arith.constant dense<0.000000e+00> : vector<16xf32>
    %74 = vector.multi_reduction <add>, %73, %cst_22 [1] : vector<16x16xf32> to vector<16xf32>
    %75 = vector.shape_cast %74 : vector<16xf32> to vector<16x1xf32>
    %76 = tpu.reciprocal %75 {approx = true} : vector<16x1xf32> -> vector<16x1xf32>
    %77 = vector.broadcast %76 : vector<16x1xf32> to vector<16x16xf32>
    %78 = arith.mulf %73, %77 : vector<16x16xf32>
    %79 = arith.truncf %78 : vector<16x16xf32> to vector<16x16xbf16>
    %80 = arith.truncf %68 : vector<16x8xf32> to vector<16x8xbf16>
    %cst_23 = arith.constant dense<0.000000e+00> : vector<16x8xf32>
    %81 = tpu.matmul %79, %80, %cst_23 {dimension_numbers = #tpu.dot_dimension_numbers<[1], [0], [0], [1], [0, 0, 1, 1], [], []>} : vector<16x16xbf16>, vector<16x8xbf16>, vector<16x8xf32> -> vector<16x8xf32>
    %82 = tpu.concatenate %27, %45, %63, %81 in 1 : vector<16x8xf32>, vector<16x8xf32>, vector<16x8xf32>, vector<16x8xf32> -> vector<16x32xf32>
    %83 = arith.truncf %82 : vector<16x32xf32> to vector<16x32xbf16>
    %84 = vector.extract_strided_slice %4 {offsets = [0, 96], sizes = [32, 32], strides = [1, 1]} : vector<32x128xbf16> to vector<32x32xbf16>
    %cst_24 = arith.constant dense<0.000000e+00> : vector<16x32xf32>
    %85 = tpu.matmul %83, %84, %cst_24 {dimension_numbers = #tpu.dot_dimension_numbers<[1], [0], [0], [1], [0, 0, 1, 1], [], []>} : vector<16x32xbf16>, vector<32x32xbf16>, vector<16x32xf32> -> vector<16x32xf32>
    %86 = vector.extract_strided_slice %3 {offsets = [0, 96], sizes = [1, 32], strides = [1, 1]} : vector<8x128xf32> to vector<1x32xf32>
    %87 = vector.broadcast %86 : vector<1x32xf32> to vector<16x32xf32>
    %88 = arith.addf %85, %87 : vector<16x32xf32>
    %89 = arith.addf %0, %88 : vector<16x32xf32>
    %90 = vector.extract_strided_slice %3 {offsets = [3, 0], sizes = [1, 32], strides = [1, 1]} : vector<8x128xf32> to vector<1x32xf32>
    %91 = vector.extract_strided_slice %3 {offsets = [4, 0], sizes = [1, 32], strides = [1, 1]} : vector<8x128xf32> to vector<1x32xf32>
    %cst_25 = arith.constant dense<0.000000e+00> : vector<16xf32>
    %92 = vector.multi_reduction <add>, %89, %cst_25 [1] : vector<16x32xf32> to vector<16xf32>
    %93 = vector.shape_cast %92 : vector<16xf32> to vector<16x1xf32>
    %cst_26 = arith.constant 3.200000e+01 : f32
    %94 = vector.broadcast %cst_26 : f32 to vector<16x1xf32>
    %95 = arith.divf %93, %94 : vector<16x1xf32>
    %96 = vector.broadcast %95 : vector<16x1xf32> to vector<16x32xf32>
    %97 = arith.subf %89, %96 : vector<16x32xf32>
    %98 = arith.mulf %97, %97 : vector<16x32xf32>
    %cst_27 = arith.constant dense<0.000000e+00> : vector<16xf32>
    %99 = vector.multi_reduction <add>, %98, %cst_27 [1] : vector<16x32xf32> to vector<16xf32>
    %100 = vector.shape_cast %99 : vector<16xf32> to vector<16x1xf32>
    %cst_28 = arith.constant 3.200000e+01 : f32
    %101 = vector.broadcast %cst_28 : f32 to vector<16x1xf32>
    %102 = arith.divf %100, %101 : vector<16x1xf32>
    %103 = vector.broadcast %95 : vector<16x1xf32> to vector<16x32xf32>
    %104 = arith.subf %89, %103 : vector<16x32xf32>
    %cst_29 = arith.constant 9.99999974E-6 : f32
    %105 = vector.broadcast %cst_29 : f32 to vector<16x1xf32>
    %106 = arith.addf %102, %105 : vector<16x1xf32>
    %107 = math.rsqrt %106 : vector<16x1xf32>
    %108 = vector.broadcast %107 : vector<16x1xf32> to vector<16x32xf32>
    %109 = arith.mulf %104, %108 : vector<16x32xf32>
    %110 = vector.broadcast %90 : vector<1x32xf32> to vector<16x32xf32>
    %111 = arith.mulf %109, %110 : vector<16x32xf32>
    %112 = vector.broadcast %91 : vector<1x32xf32> to vector<16x32xf32>
    %113 = arith.addf %111, %112 : vector<16x32xf32>
    %114 = arith.truncf %113 : vector<16x32xf32> to vector<16x32xbf16>
    %c32 = arith.constant 32 : index
    %c0_30 = arith.constant 0 : index
    %115 = vector.load %arg2[%c32, %c0_30] : memref<416x128xbf16, #tpu.memory_space<vmem>>, vector<32x128xbf16>
    %cst_31 = arith.constant dense<0.000000e+00> : vector<16x128xf32>
    %116 = tpu.matmul %114, %115, %cst_31 {dimension_numbers = #tpu.dot_dimension_numbers<[1], [0], [0], [1], [0, 0, 1, 1], [], []>} : vector<16x32xbf16>, vector<32x128xbf16>, vector<16x128xf32> -> vector<16x128xf32>
    %117 = vector.extract_strided_slice %3 {offsets = [1, 0], sizes = [1, 128], strides = [1, 1]} : vector<8x128xf32> to vector<1x128xf32>
    %118 = vector.broadcast %117 : vector<1x128xf32> to vector<16x128xf32>
    %119 = arith.addf %116, %118 : vector<16x128xf32>
    %cst_32 = arith.constant 0.000000e+00 : f32
    %120 = vector.broadcast %cst_32 : f32 to vector<16x128xf32>
    %121 = arith.maximumf %119, %120 : vector<16x128xf32>
    %122 = arith.truncf %121 : vector<16x128xf32> to vector<16x128xbf16>
    %c64 = arith.constant 64 : index
    %c0_33 = arith.constant 0 : index
    %123 = vector.load %arg2[%c64, %c0_33] : memref<416x128xbf16, #tpu.memory_space<vmem>>, vector<128x128xbf16>
    %cst_34 = arith.constant dense<0.000000e+00> : vector<16x128xf32>
    %124 = tpu.matmul %122, %123, %cst_34 {dimension_numbers = #tpu.dot_dimension_numbers<[1], [0], [0], [1], [0, 0, 1, 1], [], []>} : vector<16x128xbf16>, vector<128x128xbf16>, vector<16x128xf32> -> vector<16x128xf32>
    %125 = vector.extract_strided_slice %124 {offsets = [0, 0], sizes = [16, 32], strides = [1, 1]} : vector<16x128xf32> to vector<16x32xf32>
    %126 = vector.extract_strided_slice %3 {offsets = [2, 0], sizes = [1, 32], strides = [1, 1]} : vector<8x128xf32> to vector<1x32xf32>
    %127 = vector.broadcast %126 : vector<1x32xf32> to vector<16x32xf32>
    %128 = arith.addf %125, %127 : vector<16x32xf32>
    %129 = arith.addf %113, %128 : vector<16x32xf32>
    %130 = vector.extract_strided_slice %3 {offsets = [5, 0], sizes = [1, 32], strides = [1, 1]} : vector<8x128xf32> to vector<1x32xf32>
    %131 = vector.extract_strided_slice %3 {offsets = [6, 0], sizes = [1, 32], strides = [1, 1]} : vector<8x128xf32> to vector<1x32xf32>
    %cst_35 = arith.constant dense<0.000000e+00> : vector<16xf32>
    %132 = vector.multi_reduction <add>, %129, %cst_35 [1] : vector<16x32xf32> to vector<16xf32>
    %133 = vector.shape_cast %132 : vector<16xf32> to vector<16x1xf32>
    %cst_36 = arith.constant 3.200000e+01 : f32
    %134 = vector.broadcast %cst_36 : f32 to vector<16x1xf32>
    %135 = arith.divf %133, %134 : vector<16x1xf32>
    %136 = vector.broadcast %135 : vector<16x1xf32> to vector<16x32xf32>
    %137 = arith.subf %129, %136 : vector<16x32xf32>
    %138 = arith.mulf %137, %137 : vector<16x32xf32>
    %cst_37 = arith.constant dense<0.000000e+00> : vector<16xf32>
    %139 = vector.multi_reduction <add>, %138, %cst_37 [1] : vector<16x32xf32> to vector<16xf32>
    %140 = vector.shape_cast %139 : vector<16xf32> to vector<16x1xf32>
    %cst_38 = arith.constant 3.200000e+01 : f32
    %141 = vector.broadcast %cst_38 : f32 to vector<16x1xf32>
    %142 = arith.divf %140, %141 : vector<16x1xf32>
    %143 = vector.broadcast %135 : vector<16x1xf32> to vector<16x32xf32>
    %144 = arith.subf %129, %143 : vector<16x32xf32>
    %cst_39 = arith.constant 9.99999974E-6 : f32
    %145 = vector.broadcast %cst_39 : f32 to vector<16x1xf32>
    %146 = arith.addf %142, %145 : vector<16x1xf32>
    %147 = math.rsqrt %146 : vector<16x1xf32>
    %148 = vector.broadcast %147 : vector<16x1xf32> to vector<16x32xf32>
    %149 = arith.mulf %144, %148 : vector<16x32xf32>
    %150 = vector.broadcast %130 : vector<1x32xf32> to vector<16x32xf32>
    %151 = arith.mulf %149, %150 : vector<16x32xf32>
    %152 = vector.broadcast %131 : vector<1x32xf32> to vector<16x32xf32>
    %153 = arith.addf %151, %152 : vector<16x32xf32>
    %c1 = arith.constant 1 : index
    %c0_40 = arith.constant 0 : index
    %c0_41 = arith.constant 0 : index
    %154 = vector.load %arg3[%c1, %c0_40, %c0_41] : memref<3x8x128xf32, #tpu.memory_space<vmem>>, vector<1x8x128xf32>
    %155 = vector.shape_cast %154 : vector<1x8x128xf32> to vector<8x128xf32>
    %c192 = arith.constant 192 : index
    %c0_42 = arith.constant 0 : index
    %156 = vector.load %arg2[%c192, %c0_42] : memref<416x128xbf16, #tpu.memory_space<vmem>>, vector<32x128xbf16>
    %157 = arith.truncf %153 : vector<16x32xf32> to vector<16x32xbf16>
    %cst_43 = arith.constant dense<0.000000e+00> : vector<16x128xf32>
    %158 = tpu.matmul %157, %156, %cst_43 {dimension_numbers = #tpu.dot_dimension_numbers<[1], [0], [0], [1], [0, 0, 1, 1], [], []>} : vector<16x32xbf16>, vector<32x128xbf16>, vector<16x128xf32> -> vector<16x128xf32>
    %159 = vector.extract_strided_slice %155 {offsets = [0, 0], sizes = [1, 128], strides = [1, 1]} : vector<8x128xf32> to vector<1x128xf32>
    %160 = vector.broadcast %159 : vector<1x128xf32> to vector<16x128xf32>
    %161 = arith.addf %158, %160 : vector<16x128xf32>
    %162 = vector.extract_strided_slice %161 {offsets = [0, 0], sizes = [16, 8], strides = [1, 1]} : vector<16x128xf32> to vector<16x8xf32>
    %cst_44 = arith.constant 0.353553385 : f32
    %163 = vector.broadcast %cst_44 : f32 to vector<16x8xf32>
    %164 = arith.mulf %162, %163 : vector<16x8xf32>
    %165 = vector.extract_strided_slice %161 {offsets = [0, 32], sizes = [16, 8], strides = [1, 1]} : vector<16x128xf32> to vector<16x8xf32>
    %166 = vector.extract_strided_slice %161 {offsets = [0, 64], sizes = [16, 8], strides = [1, 1]} : vector<16x128xf32> to vector<16x8xf32>
    %167 = arith.truncf %164 : vector<16x8xf32> to vector<16x8xbf16>
    %168 = arith.truncf %165 : vector<16x8xf32> to vector<16x8xbf16>
    "tpu.trace_start"() <{level = 10 : i32, message = "qd,kd->qk"}> : () -> ()
    %cst_45 = arith.constant dense<0.000000e+00> : vector<16x16xf32>
    %169 = tpu.matmul %167, %168, %cst_45 {dimension_numbers = #tpu.dot_dimension_numbers<[1], [1], [0], [0], [0, 0, 1, 0], [], []>} : vector<16x8xbf16>, vector<16x8xbf16>, vector<16x16xf32> -> vector<16x16xf32>
    "tpu.trace_stop"() : () -> ()
    %170 = arith.addf %169, %1 : vector<16x16xf32>
    %171 = math.exp %170 : vector<16x16xf32>
    %cst_46 = arith.constant dense<0.000000e+00> : vector<16xf32>
    %172 = vector.multi_reduction <add>, %171, %cst_46 [1] : vector<16x16xf32> to vector<16xf32>
    %173 = vector.shape_cast %172 : vector<16xf32> to vector<16x1xf32>
    %174 = tpu.reciprocal %173 {approx = true} : vector<16x1xf32> -> vector<16x1xf32>
    %175 = vector.broadcast %174 : vector<16x1xf32> to vector<16x16xf32>
    %176 = arith.mulf %171, %175 : vector<16x16xf32>
    %177 = arith.truncf %176 : vector<16x16xf32> to vector<16x16xbf16>
    %178 = arith.truncf %166 : vector<16x8xf32> to vector<16x8xbf16>
    %cst_47 = arith.constant dense<0.000000e+00> : vector<16x8xf32>
    %179 = tpu.matmul %177, %178, %cst_47 {dimension_numbers = #tpu.dot_dimension_numbers<[1], [0], [0], [1], [0, 0, 1, 1], [], []>} : vector<16x16xbf16>, vector<16x8xbf16>, vector<16x8xf32> -> vector<16x8xf32>
    %180 = vector.extract_strided_slice %161 {offsets = [0, 8], sizes = [16, 8], strides = [1, 1]} : vector<16x128xf32> to vector<16x8xf32>
    %cst_48 = arith.constant 0.353553385 : f32
    %181 = vector.broadcast %cst_48 : f32 to vector<16x8xf32>
    %182 = arith.mulf %180, %181 : vector<16x8xf32>
    %183 = vector.extract_strided_slice %161 {offsets = [0, 40], sizes = [16, 8], strides = [1, 1]} : vector<16x128xf32> to vector<16x8xf32>
    %184 = vector.extract_strided_slice %161 {offsets = [0, 72], sizes = [16, 8], strides = [1, 1]} : vector<16x128xf32> to vector<16x8xf32>
    %185 = arith.truncf %182 : vector<16x8xf32> to vector<16x8xbf16>
    %186 = arith.truncf %183 : vector<16x8xf32> to vector<16x8xbf16>
    "tpu.trace_start"() <{level = 10 : i32, message = "qd,kd->qk"}> : () -> ()
    %cst_49 = arith.constant dense<0.000000e+00> : vector<16x16xf32>
    %187 = tpu.matmul %185, %186, %cst_49 {dimension_numbers = #tpu.dot_dimension_numbers<[1], [1], [0], [0], [0, 0, 1, 0], [], []>} : vector<16x8xbf16>, vector<16x8xbf16>, vector<16x16xf32> -> vector<16x16xf32>
    "tpu.trace_stop"() : () -> ()
    %188 = arith.addf %187, %1 : vector<16x16xf32>
    %189 = math.exp %188 : vector<16x16xf32>
    %cst_50 = arith.constant dense<0.000000e+00> : vector<16xf32>
    %190 = vector.multi_reduction <add>, %189, %cst_50 [1] : vector<16x16xf32> to vector<16xf32>
    %191 = vector.shape_cast %190 : vector<16xf32> to vector<16x1xf32>
    %192 = tpu.reciprocal %191 {approx = true} : vector<16x1xf32> -> vector<16x1xf32>
    %193 = vector.broadcast %192 : vector<16x1xf32> to vector<16x16xf32>
    %194 = arith.mulf %189, %193 : vector<16x16xf32>
    %195 = arith.truncf %194 : vector<16x16xf32> to vector<16x16xbf16>
    %196 = arith.truncf %184 : vector<16x8xf32> to vector<16x8xbf16>
    %cst_51 = arith.constant dense<0.000000e+00> : vector<16x8xf32>
    %197 = tpu.matmul %195, %196, %cst_51 {dimension_numbers = #tpu.dot_dimension_numbers<[1], [0], [0], [1], [0, 0, 1, 1], [], []>} : vector<16x16xbf16>, vector<16x8xbf16>, vector<16x8xf32> -> vector<16x8xf32>
    %198 = vector.extract_strided_slice %161 {offsets = [0, 16], sizes = [16, 8], strides = [1, 1]} : vector<16x128xf32> to vector<16x8xf32>
    %cst_52 = arith.constant 0.353553385 : f32
    %199 = vector.broadcast %cst_52 : f32 to vector<16x8xf32>
    %200 = arith.mulf %198, %199 : vector<16x8xf32>
    %201 = vector.extract_strided_slice %161 {offsets = [0, 48], sizes = [16, 8], strides = [1, 1]} : vector<16x128xf32> to vector<16x8xf32>
    %202 = vector.extract_strided_slice %161 {offsets = [0, 80], sizes = [16, 8], strides = [1, 1]} : vector<16x128xf32> to vector<16x8xf32>
    %203 = arith.truncf %200 : vector<16x8xf32> to vector<16x8xbf16>
    %204 = arith.truncf %201 : vector<16x8xf32> to vector<16x8xbf16>
    "tpu.trace_start"() <{level = 10 : i32, message = "qd,kd->qk"}> : () -> ()
    %cst_53 = arith.constant dense<0.000000e+00> : vector<16x16xf32>
    %205 = tpu.matmul %203, %204, %cst_53 {dimension_numbers = #tpu.dot_dimension_numbers<[1], [1], [0], [0], [0, 0, 1, 0], [], []>} : vector<16x8xbf16>, vector<16x8xbf16>, vector<16x16xf32> -> vector<16x16xf32>
    "tpu.trace_stop"() : () -> ()
    %206 = arith.addf %205, %1 : vector<16x16xf32>
    %207 = math.exp %206 : vector<16x16xf32>
    %cst_54 = arith.constant dense<0.000000e+00> : vector<16xf32>
    %208 = vector.multi_reduction <add>, %207, %cst_54 [1] : vector<16x16xf32> to vector<16xf32>
    %209 = vector.shape_cast %208 : vector<16xf32> to vector<16x1xf32>
    %210 = tpu.reciprocal %209 {approx = true} : vector<16x1xf32> -> vector<16x1xf32>
    %211 = vector.broadcast %210 : vector<16x1xf32> to vector<16x16xf32>
    %212 = arith.mulf %207, %211 : vector<16x16xf32>
    %213 = arith.truncf %212 : vector<16x16xf32> to vector<16x16xbf16>
    %214 = arith.truncf %202 : vector<16x8xf32> to vector<16x8xbf16>
    %cst_55 = arith.constant dense<0.000000e+00> : vector<16x8xf32>
    %215 = tpu.matmul %213, %214, %cst_55 {dimension_numbers = #tpu.dot_dimension_numbers<[1], [0], [0], [1], [0, 0, 1, 1], [], []>} : vector<16x16xbf16>, vector<16x8xbf16>, vector<16x8xf32> -> vector<16x8xf32>
    %216 = vector.extract_strided_slice %161 {offsets = [0, 24], sizes = [16, 8], strides = [1, 1]} : vector<16x128xf32> to vector<16x8xf32>
    %cst_56 = arith.constant 0.353553385 : f32
    %217 = vector.broadcast %cst_56 : f32 to vector<16x8xf32>
    %218 = arith.mulf %216, %217 : vector<16x8xf32>
    %219 = vector.extract_strided_slice %161 {offsets = [0, 56], sizes = [16, 8], strides = [1, 1]} : vector<16x128xf32> to vector<16x8xf32>
    %220 = vector.extract_strided_slice %161 {offsets = [0, 88], sizes = [16, 8], strides = [1, 1]} : vector<16x128xf32> to vector<16x8xf32>
    %221 = arith.truncf %218 : vector<16x8xf32> to vector<16x8xbf16>
    %222 = arith.truncf %219 : vector<16x8xf32> to vector<16x8xbf16>
    "tpu.trace_start"() <{level = 10 : i32, message = "qd,kd->qk"}> : () -> ()
    %cst_57 = arith.constant dense<0.000000e+00> : vector<16x16xf32>
    %223 = tpu.matmul %221, %222, %cst_57 {dimension_numbers = #tpu.dot_dimension_numbers<[1], [1], [0], [0], [0, 0, 1, 0], [], []>} : vector<16x8xbf16>, vector<16x8xbf16>, vector<16x16xf32> -> vector<16x16xf32>
    "tpu.trace_stop"() : () -> ()
    %224 = arith.addf %223, %1 : vector<16x16xf32>
    %225 = math.exp %224 : vector<16x16xf32>
    %cst_58 = arith.constant dense<0.000000e+00> : vector<16xf32>
    %226 = vector.multi_reduction <add>, %225, %cst_58 [1] : vector<16x16xf32> to vector<16xf32>
    %227 = vector.shape_cast %226 : vector<16xf32> to vector<16x1xf32>
    %228 = tpu.reciprocal %227 {approx = true} : vector<16x1xf32> -> vector<16x1xf32>
    %229 = vector.broadcast %228 : vector<16x1xf32> to vector<16x16xf32>
    %230 = arith.mulf %225, %229 : vector<16x16xf32>
    %231 = arith.truncf %230 : vector<16x16xf32> to vector<16x16xbf16>
    %232 = arith.truncf %220 : vector<16x8xf32> to vector<16x8xbf16>
    %cst_59 = arith.constant dense<0.000000e+00> : vector<16x8xf32>
    %233 = tpu.matmul %231, %232, %cst_59 {dimension_numbers = #tpu.dot_dimension_numbers<[1], [0], [0], [1], [0, 0, 1, 1], [], []>} : vector<16x16xbf16>, vector<16x8xbf16>, vector<16x8xf32> -> vector<16x8xf32>
    %234 = tpu.concatenate %179, %197, %215, %233 in 1 : vector<16x8xf32>, vector<16x8xf32>, vector<16x8xf32>, vector<16x8xf32> -> vector<16x32xf32>
    %235 = arith.truncf %234 : vector<16x32xf32> to vector<16x32xbf16>
    %236 = vector.extract_strided_slice %156 {offsets = [0, 96], sizes = [32, 32], strides = [1, 1]} : vector<32x128xbf16> to vector<32x32xbf16>
    %cst_60 = arith.constant dense<0.000000e+00> : vector<16x32xf32>
    %237 = tpu.matmul %235, %236, %cst_60 {dimension_numbers = #tpu.dot_dimension_numbers<[1], [0], [0], [1], [0, 0, 1, 1], [], []>} : vector<16x32xbf16>, vector<32x32xbf16>, vector<16x32xf32> -> vector<16x32xf32>
    %238 = vector.extract_strided_slice %155 {offsets = [0, 96], sizes = [1, 32], strides = [1, 1]} : vector<8x128xf32> to vector<1x32xf32>
    %239 = vector.broadcast %238 : vector<1x32xf32> to vector<16x32xf32>
    %240 = arith.addf %237, %239 : vector<16x32xf32>
    %241 = arith.addf %153, %240 : vector<16x32xf32>
    %242 = vector.extract_strided_slice %155 {offsets = [3, 0], sizes = [1, 32], strides = [1, 1]} : vector<8x128xf32> to vector<1x32xf32>
    %243 = vector.extract_strided_slice %155 {offsets = [4, 0], sizes = [1, 32], strides = [1, 1]} : vector<8x128xf32> to vector<1x32xf32>
    %cst_61 = arith.constant dense<0.000000e+00> : vector<16xf32>
    %244 = vector.multi_reduction <add>, %241, %cst_61 [1] : vector<16x32xf32> to vector<16xf32>
    %245 = vector.shape_cast %244 : vector<16xf32> to vector<16x1xf32>
    %cst_62 = arith.constant 3.200000e+01 : f32
    %246 = vector.broadcast %cst_62 : f32 to vector<16x1xf32>
    %247 = arith.divf %245, %246 : vector<16x1xf32>
    %248 = vector.broadcast %247 : vector<16x1xf32> to vector<16x32xf32>
    %249 = arith.subf %241, %248 : vector<16x32xf32>
    %250 = arith.mulf %249, %249 : vector<16x32xf32>
    %cst_63 = arith.constant dense<0.000000e+00> : vector<16xf32>
    %251 = vector.multi_reduction <add>, %250, %cst_63 [1] : vector<16x32xf32> to vector<16xf32>
    %252 = vector.shape_cast %251 : vector<16xf32> to vector<16x1xf32>
    %cst_64 = arith.constant 3.200000e+01 : f32
    %253 = vector.broadcast %cst_64 : f32 to vector<16x1xf32>
    %254 = arith.divf %252, %253 : vector<16x1xf32>
    %255 = vector.broadcast %247 : vector<16x1xf32> to vector<16x32xf32>
    %256 = arith.subf %241, %255 : vector<16x32xf32>
    %cst_65 = arith.constant 9.99999974E-6 : f32
    %257 = vector.broadcast %cst_65 : f32 to vector<16x1xf32>
    %258 = arith.addf %254, %257 : vector<16x1xf32>
    %259 = math.rsqrt %258 : vector<16x1xf32>
    %260 = vector.broadcast %259 : vector<16x1xf32> to vector<16x32xf32>
    %261 = arith.mulf %256, %260 : vector<16x32xf32>
    %262 = vector.broadcast %242 : vector<1x32xf32> to vector<16x32xf32>
    %263 = arith.mulf %261, %262 : vector<16x32xf32>
    %264 = vector.broadcast %243 : vector<1x32xf32> to vector<16x32xf32>
    %265 = arith.addf %263, %264 : vector<16x32xf32>
    %266 = arith.truncf %265 : vector<16x32xf32> to vector<16x32xbf16>
    %c224 = arith.constant 224 : index
    %c0_66 = arith.constant 0 : index
    %267 = vector.load %arg2[%c224, %c0_66] : memref<416x128xbf16, #tpu.memory_space<vmem>>, vector<32x128xbf16>
    %cst_67 = arith.constant dense<0.000000e+00> : vector<16x128xf32>
    %268 = tpu.matmul %266, %267, %cst_67 {dimension_numbers = #tpu.dot_dimension_numbers<[1], [0], [0], [1], [0, 0, 1, 1], [], []>} : vector<16x32xbf16>, vector<32x128xbf16>, vector<16x128xf32> -> vector<16x128xf32>
    %269 = vector.extract_strided_slice %155 {offsets = [1, 0], sizes = [1, 128], strides = [1, 1]} : vector<8x128xf32> to vector<1x128xf32>
    %270 = vector.broadcast %269 : vector<1x128xf32> to vector<16x128xf32>
    %271 = arith.addf %268, %270 : vector<16x128xf32>
    %cst_68 = arith.constant 0.000000e+00 : f32
    %272 = vector.broadcast %cst_68 : f32 to vector<16x128xf32>
    %273 = arith.maximumf %271, %272 : vector<16x128xf32>
    %274 = arith.truncf %273 : vector<16x128xf32> to vector<16x128xbf16>
    %c256 = arith.constant 256 : index
    %c0_69 = arith.constant 0 : index
    %275 = vector.load %arg2[%c256, %c0_69] : memref<416x128xbf16, #tpu.memory_space<vmem>>, vector<128x128xbf16>
    %cst_70 = arith.constant dense<0.000000e+00> : vector<16x128xf32>
    %276 = tpu.matmul %274, %275, %cst_70 {dimension_numbers = #tpu.dot_dimension_numbers<[1], [0], [0], [1], [0, 0, 1, 1], [], []>} : vector<16x128xbf16>, vector<128x128xbf16>, vector<16x128xf32> -> vector<16x128xf32>
    %277 = vector.extract_strided_slice %276 {offsets = [0, 0], sizes = [16, 32], strides = [1, 1]} : vector<16x128xf32> to vector<16x32xf32>
    %278 = vector.extract_strided_slice %155 {offsets = [2, 0], sizes = [1, 32], strides = [1, 1]} : vector<8x128xf32> to vector<1x32xf32>
    %279 = vector.broadcast %278 : vector<1x32xf32> to vector<16x32xf32>
    %280 = arith.addf %277, %279 : vector<16x32xf32>
    %281 = arith.addf %265, %280 : vector<16x32xf32>
    %282 = vector.extract_strided_slice %155 {offsets = [5, 0], sizes = [1, 32], strides = [1, 1]} : vector<8x128xf32> to vector<1x32xf32>
    %283 = vector.extract_strided_slice %155 {offsets = [6, 0], sizes = [1, 32], strides = [1, 1]} : vector<8x128xf32> to vector<1x32xf32>
    %cst_71 = arith.constant dense<0.000000e+00> : vector<16xf32>
    %284 = vector.multi_reduction <add>, %281, %cst_71 [1] : vector<16x32xf32> to vector<16xf32>
    %285 = vector.shape_cast %284 : vector<16xf32> to vector<16x1xf32>
    %cst_72 = arith.constant 3.200000e+01 : f32
    %286 = vector.broadcast %cst_72 : f32 to vector<16x1xf32>
    %287 = arith.divf %285, %286 : vector<16x1xf32>
    %288 = vector.broadcast %287 : vector<16x1xf32> to vector<16x32xf32>
    %289 = arith.subf %281, %288 : vector<16x32xf32>
    %290 = arith.mulf %289, %289 : vector<16x32xf32>
    %cst_73 = arith.constant dense<0.000000e+00> : vector<16xf32>
    %291 = vector.multi_reduction <add>, %290, %cst_73 [1] : vector<16x32xf32> to vector<16xf32>
    %292 = vector.shape_cast %291 : vector<16xf32> to vector<16x1xf32>
    %cst_74 = arith.constant 3.200000e+01 : f32
    %293 = vector.broadcast %cst_74 : f32 to vector<16x1xf32>
    %294 = arith.divf %292, %293 : vector<16x1xf32>
    %295 = vector.broadcast %287 : vector<16x1xf32> to vector<16x32xf32>
    %296 = arith.subf %281, %295 : vector<16x32xf32>
    %cst_75 = arith.constant 9.99999974E-6 : f32
    %297 = vector.broadcast %cst_75 : f32 to vector<16x1xf32>
    %298 = arith.addf %294, %297 : vector<16x1xf32>
    %299 = math.rsqrt %298 : vector<16x1xf32>
    %300 = vector.broadcast %299 : vector<16x1xf32> to vector<16x32xf32>
    %301 = arith.mulf %296, %300 : vector<16x32xf32>
    %302 = vector.broadcast %282 : vector<1x32xf32> to vector<16x32xf32>
    %303 = arith.mulf %301, %302 : vector<16x32xf32>
    %304 = vector.broadcast %283 : vector<1x32xf32> to vector<16x32xf32>
    %305 = arith.addf %303, %304 : vector<16x32xf32>
    %c2 = arith.constant 2 : index
    %c0_76 = arith.constant 0 : index
    %c0_77 = arith.constant 0 : index
    %306 = vector.load %arg3[%c2, %c0_76, %c0_77] : memref<3x8x128xf32, #tpu.memory_space<vmem>>, vector<1x8x128xf32>
    %307 = vector.shape_cast %306 : vector<1x8x128xf32> to vector<8x128xf32>
    %308 = vector.extract_strided_slice %307 {offsets = [0, 0], sizes = [1, 32], strides = [1, 1]} : vector<8x128xf32> to vector<1x32xf32>
    %309 = vector.extract_strided_slice %307 {offsets = [1, 0], sizes = [1, 32], strides = [1, 1]} : vector<8x128xf32> to vector<1x32xf32>
    %cst_78 = arith.constant dense<0.000000e+00> : vector<16xf32>
    %310 = vector.multi_reduction <add>, %305, %cst_78 [1] : vector<16x32xf32> to vector<16xf32>
    %311 = vector.shape_cast %310 : vector<16xf32> to vector<16x1xf32>
    %cst_79 = arith.constant 3.200000e+01 : f32
    %312 = vector.broadcast %cst_79 : f32 to vector<16x1xf32>
    %313 = arith.divf %311, %312 : vector<16x1xf32>
    %314 = vector.broadcast %313 : vector<16x1xf32> to vector<16x32xf32>
    %315 = arith.subf %305, %314 : vector<16x32xf32>
    %316 = arith.mulf %315, %315 : vector<16x32xf32>
    %cst_80 = arith.constant dense<0.000000e+00> : vector<16xf32>
    %317 = vector.multi_reduction <add>, %316, %cst_80 [1] : vector<16x32xf32> to vector<16xf32>
    %318 = vector.shape_cast %317 : vector<16xf32> to vector<16x1xf32>
    %cst_81 = arith.constant 3.200000e+01 : f32
    %319 = vector.broadcast %cst_81 : f32 to vector<16x1xf32>
    %320 = arith.divf %318, %319 : vector<16x1xf32>
    %321 = vector.broadcast %313 : vector<16x1xf32> to vector<16x32xf32>
    %322 = arith.subf %305, %321 : vector<16x32xf32>
    %cst_82 = arith.constant 9.99999974E-6 : f32
    %323 = vector.broadcast %cst_82 : f32 to vector<16x1xf32>
    %324 = arith.addf %320, %323 : vector<16x1xf32>
    %325 = math.rsqrt %324 : vector<16x1xf32>
    %326 = vector.broadcast %325 : vector<16x1xf32> to vector<16x32xf32>
    %327 = arith.mulf %322, %326 : vector<16x32xf32>
    %328 = vector.broadcast %308 : vector<1x32xf32> to vector<16x32xf32>
    %329 = arith.mulf %327, %328 : vector<16x32xf32>
    %330 = vector.broadcast %309 : vector<1x32xf32> to vector<16x32xf32>
    %331 = arith.addf %329, %330 : vector<16x32xf32>
    %332 = arith.truncf %331 : vector<16x32xf32> to vector<16x32xbf16>
    %c384 = arith.constant 384 : index
    %c0_83 = arith.constant 0 : index
    %333 = vector.load %arg2[%c384, %c0_83] : memref<416x128xbf16, #tpu.memory_space<vmem>>, vector<32x128xbf16>
    %cst_84 = arith.constant dense<0.000000e+00> : vector<16x128xf32>
    %334 = tpu.matmul %332, %333, %cst_84 {dimension_numbers = #tpu.dot_dimension_numbers<[1], [0], [0], [1], [0, 0, 1, 1], [], []>} : vector<16x32xbf16>, vector<32x128xbf16>, vector<16x128xf32> -> vector<16x128xf32>
    %335 = vector.extract_strided_slice %307 {offsets = [2, 0], sizes = [1, 128], strides = [1, 1]} : vector<8x128xf32> to vector<1x128xf32>
    %336 = vector.broadcast %335 : vector<1x128xf32> to vector<16x128xf32>
    %337 = arith.addf %334, %336 : vector<16x128xf32>
    %c0_85 = arith.constant 0 : index
    %c0_86 = arith.constant 0 : index
    %338 = vector.load %arg4[%c0_85, %c0_86] : memref<16x128xf32, #tpu.memory_space<vmem>>, vector<16x128xf32>
    tpu.vector_store %arg4[%c0_85, %c0_86], %337 {strides = array<i32>} : memref<16x128xf32, #tpu.memory_space<vmem>>, vector<16x128xf32>,
    return
  }
}

</mosaic_0001>

<bundles_post_ra>
// kernel: bert4rec_forward.1
= control target key start
LH: loop header
LB: loop body
LE: loop exit
PB: predicated region body
PF: predicated region fallthrough
CT: control target
= control target key end

     0   :  { %s1962_s0 = inlined_call_operand.vmem [shape: f32[16,32], index: 0, kind: input, shape index: {}]   ;;  %s1963_s1 = inlined_call_operand.vmem [shape: f32[16,16], index: 1, kind: input, shape index: {}]   ;;  %s1964_s2 = inlined_call_operand.vmem [shape: bf16[416,128], index: 2, kind: input, shape index: {}]   ;;  %s1965_s3 = inlined_call_operand.vmem [shape: f32[3,8,128], index: 3, kind: input, shape index: {}]   ;;  %s1966_s4 = inlined_call_operand.hbm [shape: f32[16,128], index: 4, kind: output, shape index: {}]  }
   0x1   :  { %v1617_v0 = vld [vmem:[%s1964_s2 + $0x8] sm:$0xff] }
   0x2   :  { %9 = vsyncpa [#allocation3], 0  ;;  %52 = vmatpush.bf16.msra.mxu0 %v1617_v0  ;;  %v1623_v1 = vld [vmem:[%s1964_s2] sm:$0xff]  ;;  %v1633_v3 = vld [vmem:[%s1962_s0 + $0x8] sm:$0xff]  ;;  %vm42_vm0 = vcmask 261120   ;;  %s1572_s25 = smov 88  }
   0x3   :  { %v1628_v2 = vld [vmem:[%s1962_s0] sm:$0xff]  ;;  %s1571_s0 = smov 96   ;;  %s1573_s26 = smov 104   ;;  %vm67_vm1 = vcmask 64512   ;;  %v1681_v32 = vld [vmem:[%s1963_s1 + $0x8] sm:$0xff]  ;;  %vm92_vm2 = vcmask 130048  }
   0x4   :  { %v28_v4 = vpack.c.bf16 %v1633_v3, %v1628_v2  ;;  %v1642_v5 = vld [vmem:[%s1965_s3] sm:$0xff]  ;;  %s1574_s27 = smov 72   ;;  %s1575_s28 = smov 120   ;;  %vm330_vm3 = vcmask 195584  }
   0x5   :  { %v1645_v7 = vperm.slane %v1642_v5, 0  ;;  %s1576_s29 = smov 80   ;;  %s1577_s30 = smov 112   ;;  %v1675_v27 = vld [vmem:[%s1963_s1] sm:$0xff] }
   0x6   :  { %53 = vmatpush.bf16.msra.mxu0 %v1623_v1  ;;  %s1578_s5 = smov 64   ;;  %s1579_s1 = smov 56  }
   0x7   :  { %s1580_s10 = smov 40   ;;  %s1581_s11 = smov 48  }
   0x8   :  { %s1582_s12 = smov 32   ;;  %s1583_s13 = smov 8  }
   0x9   :  { %1264 = vmatmul.msk.bf16.vlgmr.msra.gmra.mxu0 %vm42_vm0, %v28_v4  ;;  %s1584_s14 = smov 24   ;;  %s1585_s15 = smov 16  }
  0x86   :  { %v55_v6 = vpop.f32.mrf.mxu0 }
  0x87   :  { %v56_v8 = vadd.f32 %v55_v6, %v1645_v7 }
  0x89   :  { %v60_v11 = vmul.f32 0.35355338, %v56_v8 }
  0x8e   :  { %v57_v9 = vpop.f32.mrf.mxu0 }
  0x8f   :  { %v58_v10 = vadd.f32 %v57_v9, %v1645_v7 }
  0x91   :  { %v61_v12 = vmul.f32 0.35355338, %v58_v10  ;;  %v1649_v13 = vpack.c.bf16 %v58_v10, %v56_v8 }
  0x93   :  { %v62_v14 = vpack.c.bf16 %v61_v12, %v60_v11  ;;  %65 = vrot.lane.b32.xlu1 %v1649_v13, %s1571_s0  ;;  %127 = vrot.lane.b32.xlu0 %v1649_v13, %s1572_s25 }
  0x95   :  { %243 = vrot.lane.b32.xlu2 %v62_v14, %s1573_s26 }
  0x9b   :  { %245 = vrot.lane.b32.xlu1 %v1649_v13, %s1574_s27  ;;  %125 = vrot.lane.b32.xlu0 %v62_v14, %s1575_s28 }
  0x9d   :  { %186 = vrot.lane.b32.xlu2 %v1649_v13, %s1576_s29 }
  0xa3   :  { %184 = vrot.lane.b32.xlu0 %v62_v14, %s1577_s30 }
  0xa5   :  { %104 = vrot.lane.b32.xlu2 %v1649_v13, %s1578_s5 }
  0xef   :  { %v244_v15 = vpop.permute.xlu2 %243 }
  0xf7   :  { %v187_v16 = vpop.permute.xlu2 %186 }
  0xf8   :  { %v192_v17 = vsel %vm67_vm1, %v187_v16, 0 }
  0xf9   :  { %201 = vmatpush.bf16.xpose.msrb.mxu0 %v192_v17 }
  0xff   :  { %v105_v22 = vpop.permute.xlu2 %104 }
 0x105   :  { %v66_v18 = vpop.permute.xlu1 %65  ;;  %v128_v19 = vpop.permute.xlu0 %127 }
 0x106   :  { %v72_v20 = vsel %vm67_vm1, %v66_v18, 0  ;;  %v133_v21 = vsel %vm67_vm1, %v128_v19, 0 }
 0x107   :  { %81 = vmatpush.bf16.xpose.msra.mxu1 %v72_v20  ;;  %142 = vmatpush.bf16.xpose.msra.mxu3 %v133_v21 }
 0x10d   :  { %v246_v23 = vpop.permute.xlu1 %245  ;;  %v126_v24 = vpop.permute.xlu0 %125 }
 0x10e   :  { %1265 = vmatmul.msk.bf16.vlgmr.msra.gmra.mxu1 %vm67_vm1, %v62_v14  ;;  %1267 = vmatmul.msk.bf16.vlgmr.msra.gmra.mxu3 %vm67_vm1, %v126_v24  ;;  %v251_v25 = vsel %vm67_vm1, %v246_v23, 0 }
 0x10f   :  { %117 = vmatpush.bf16.msrb.mxu1 %v105_v22  ;;  %260 = vmatpush.bf16.xpose.msrb.mxu3 %v251_v25 }
 0x115   :  { %v185_v26 = vpop.permute.xlu0 %184 }
 0x116   :  { %1269 = vmatmul.msk.bf16.vlgmr.msrb.gmra.mxu0 %vm67_vm1, %v185_v26 }
 0x11e   :  { %1271 = vmatmul.msk.bf16.vlgmr.msrb.gmra.mxu3 %vm67_vm1, %v244_v15 }
 0x18b   :  { %v83_v28 = vpop.f32.mrf.mxu1 }
 0x18c   :  { %v84_v29 = vadd.f32 %v83_v28, %v1675_v27 }
 0x18e   :  { %v88_v30 = vmul.f32 1.442695, %v84_v29 }
 0x190   :  { %1459 = vpow2.f32 %v88_v30 }
 0x191   :  { %v144_v31 = vpop.f32.mrf.mxu3 }
 0x192   :  { %v145_v33 = vadd.f32 %v144_v31, %v1675_v27 }
 0x193   :  { %v85_v34 = vpop.f32.mrf.mxu1  ;;  %v203_v35 = vpop.f32.mrf.mxu0 }
 0x194   :  { %v149_v36 = vmul.f32 1.442695, %v145_v33  ;;  %v86_v37 = vadd.f32 %v85_v34, %v1681_v32  ;;  %v204_v38 = vadd.f32 %v203_v35, %v1675_v27 }
 0x196   :  { %v1460_v39 = vpop.eup %1459  ;;  %1461 = vpow2.f32 %v149_v36  ;;  %v90_v40 = vmul.f32 1.442695, %v86_v37  ;;  %v208_v41 = vmul.f32 1.442695, %v204_v38 }
 0x197   :  { %v93_v42 = vsel %vm92_vm2, %v1460_v39, 0.0 }
 0x198   :  { %1463 = vpow2.f32 %v90_v40  ;;  %94 = vadd.xlane.f32.xlu0 %v93_v42 }
 0x199   :  { %1465 = vpow2.f32 %v208_v41  ;;  %v146_v43 = vpop.f32.mrf.mxu3 }
 0x19a   :  { %v147_v44 = vadd.f32 %v146_v43, %v1681_v32 }
 0x19b   :  { %v205_v4 = vpop.f32.mrf.mxu0 }
 0x19c   :  { %v1462_v45 = vpop.eup %1461  ;;  %v151_v46 = vmul.f32 1.442695, %v147_v44  ;;  %v206_v6 = vadd.f32 %v205_v4, %v1681_v32 }
 0x19d   :  { %v153_v47 = vsel %vm92_vm2, %v1462_v45, 0.0 }
 0x19e   :  { %v1464_v48 = vpop.eup %1463  ;;  %1467 = vpow2.f32 %v151_v46  ;;  %154 = vadd.xlane.f32.xlu1 %v153_v47  ;;  %v210_v8 = vmul.f32 1.442695, %v206_v6 }
 0x19f   :  { %v1689_v49 = vpop.eup %1465  ;;  %v96_v50 = vsel %vm92_vm2, %v1464_v48, 0.0 }
 0x1a0   :  { %97 = vadd.xlane.f32.xlu2 %v96_v50  ;;  %v212_v51 = vsel %vm92_vm2, %v1689_v49, 0.0 }
 0x1a1   :  { %213 = vadd.xlane.f32.xlu0 %v212_v51  ;;  %v262_v52 = vpop.f32.mrf.mxu3 }
 0x1a2   :  { %v263_v53 = vadd.f32 %v262_v52, %v1675_v27 }
 0x1a4   :  { %v1468_v54 = vpop.eup %1467  ;;  %v267_v55 = vmul.f32 1.442695, %v263_v53 }
 0x1a5   :  { %v156_v56 = vsel %vm92_vm2, %v1468_v54, 0.0 }
 0x1a6   :  { %1469 = vpow2.f32 %v267_v55 }
 0x1a8   :  { %157 = vadd.xlane.f32.xlu2 %v156_v56 }
 0x1a9   :  { %v264_v57 = vpop.f32.mrf.mxu3 }
 0x1aa   :  { %v265_v58 = vadd.f32 %v264_v57, %v1681_v32 }
 0x1ac   :  { %v1470_v59 = vpop.eup %1469  ;;  %v269_v60 = vmul.f32 1.442695, %v265_v58 }
 0x1ad   :  { %v271_v61 = vsel %vm92_vm2, %v1470_v59, 0.0 }
 0x1ae   :  { %1471 = vpow2.f32 %v269_v60  ;;  %272 = vadd.xlane.f32.xlu0 %v271_v61 }
 0x1af   :  { %1473 = vpow2.f32 %v210_v8 }
 0x1b4   :  { %v1472_v62 = vpop.eup %1471 }
 0x1b5   :  { %v274_v63 = vsel %vm92_vm2, %v1472_v62, 0.0  ;;  %v1474_v9 = vpop.eup %1473 }
 0x1b6   :  { %275 = vadd.xlane.f32.xlu0 %v274_v63  ;;  %v215_v10 = vsel %vm92_vm2, %v1474_v9, 0.0 }
 0x1b7   :  { %164 = vrot.lane.b32.xlu1 %v1649_v13, %s1579_s1 }
 0x1c0   :  { %282 = vrot.lane.b32.xlu2 %v1649_v13, %s1580_s10 }
 0x1c8   :  { %336 = vrot.lane.b32.xlu2 %v1617_v0, %s1582_s12 }
 0x1ca   :  { %223 = vrot.lane.b32.xlu0 %v1649_v13, %s1581_s11 }
 0x1e1   :  { %216 = vadd.xlane.f32.xlu1 %v215_v10 }
 0x20b   :  { %v95_v11 = vpop.xlane.xlu0 %94 }
 0x20c   :  { %1475 = vrcp.f32 %v95_v11 }
 0x211   :  { %v155_v13 = vpop.xlane.xlu1 %154 }
 0x212   :  { %v1476_v14 = vpop.eup %1475 }
 0x213   :  { %v98_v12 = vpop.xlane.xlu2 %97  ;;  %v101_v17 = vmul.f32 %v1476_v14, %v1460_v39 }
 0x214   :  { %1477 = vrcp.f32 %v98_v12  ;;  %v214_v15 = vpop.xlane.xlu0 %213 }
 0x21a   :  { %v1478_v16 = vpop.eup %1477 }
 0x21b   :  { %v102_v18 = vmul.f32 %v1478_v16, %v1464_v48  ;;  %v158_v19 = vpop.xlane.xlu2 %157 }
 0x21c   :  { %1479 = vrcp.f32 %v158_v19 }
 0x21d   :  { %v103_v20 = vpack.c.bf16 %v102_v18, %v101_v17  ;;  %1481 = vrcp.f32 %v155_v13 }
 0x21f   :  { %1266 = vmatmul.msk.bf16.vlgmr.msrb.gmra.mxu1 %vm92_vm2, %v103_v20 }
 0x221   :  { %v273_v21 = vpop.xlane.xlu0 %272 }
 0x222   :  { %v1480_v22 = vpop.eup %1479 }
 0x223   :  { %v1482_v23 = vpop.eup %1481  ;;  %v162_v24 = vmul.f32 %v1480_v22, %v1468_v54  ;;  %v283_v28 = vpop.permute.xlu2 %282 }
 0x224   :  { %v161_v26 = vmul.f32 %v1482_v23, %v1462_v45 }
 0x226   :  { %v163_v30 = vpack.c.bf16 %v162_v24, %v161_v26 }
 0x229   :  { %v165_v25 = vpop.permute.xlu1 %164  ;;  %v276_v29 = vpop.xlane.xlu0 %275 }
 0x22a   :  { %177 = vmatpush.bf16.msra.mxu2 %v165_v25  ;;  %1483 = vrcp.f32 %v276_v29 }
 0x22b   :  { %1485 = vrcp.f32 %v273_v21  ;;  %v337_v51 = vpop.permute.xlu2 %336  ;;  %v1586_v21 = vmov 32.0  }
 0x22c   :  { %1487 = vrcp.f32 %v214_v15  ;;  %353 = vmatpush.bf16.msra.mxu0 %v337_v51 }
 0x22d   :  { %1268 = vmatmul.msk.bf16.vlgmr.msra.gmra.mxu2 %vm92_vm2, %v163_v30 }
 0x22e   :  { %295 = vmatpush.bf16.msrb.mxu2 %v283_v28 }
 0x230   :  { %v1484_v31 = vpop.eup %1483 }
 0x231   :  { %v1486_v33 = vpop.eup %1485  ;;  %v280_v34 = vmul.f32 %v1484_v31, %v1472_v62 }
 0x232   :  { %v279_v35 = vmul.f32 %v1486_v33, %v1470_v59  ;;  %v1488_v39 = vpop.eup %1487 }
 0x233   :  { %v220_v41 = vmul.f32 %v1488_v39, %v1689_v49 }
 0x234   :  { %v281_v36 = vpack.c.bf16 %v280_v34, %v279_v35 }
 0x23c   :  { %v224_v37 = vpop.permute.xlu0 %223 }
 0x23d   :  { %236 = vmatpush.bf16.msra.mxu1 %v224_v37  ;;  %1272 = vmatmul.msk.bf16.vlgmr.msrb.gmra.mxu2 %vm92_vm2, %v281_v36 }
 0x254   :  { %v217_v38 = vpop.xlane.xlu1 %216 }
 0x255   :  { %1489 = vrcp.f32 %v217_v38  ;;  %v1388_v38 = vld [vmem:[%s1964_s2 + $0x18] sm:$0xff] }
 0x256   :  { %1491 = vrcp.f32 %v1586_v21  ;;  %447 = vmatpush.bf16.msrb.mxu1 %v1388_v38 }
 0x25b   :  { %v1490_v40 = vpop.eup %1489 }
 0x25c   :  { %v221_v42 = vmul.f32 %v1490_v40, %v1474_v9  ;;  %v1492_v22 = vpop.eup %1491 }
 0x25d   :  { %v370_v23 = vmul.f32 32.0, %v1492_v22  ;;  %vm374_vm4 = vweird.f32 %v1492_v22 }
 0x25e   :  { %v222_v43 = vpack.c.bf16 %v221_v42, %v220_v41  ;;  %v1387_v42 = vld [vmem:[%s1964_s2 + $0x10] sm:$0xff] }
 0x25f   :  { %v371_v24 = vsub.f32 1.0, %v370_v23  ;;  %448 = vmatpush.bf16.msrb.mxu1 %v1387_v42 }
 0x260   :  { %1270 = vmatmul.msk.bf16.vlgmr.msra.gmra.mxu1 %vm92_vm2, %v222_v43  ;;  %v1396_v43 = vld [vmem:[%s1964_s2 + $0x58] sm:$0xff] }
 0x261   :  { %v372_v25 = vmul.f32 %v1492_v22, %v371_v24  ;;  %522 = vmatpush.bf16.msra.mxu3 %v1396_v43  ;;  %v536_v24 = vperm.slane %v1642_v5, 2 }
 0x263   :  { %v373_v26 = vadd.f32 %v1492_v22, %v372_v25 }
 0x265   :  { %v1732_v28 = vsel %vm374_vm4, %v1492_v22, %v373_v26 }
 0x29c   :  { %v119_v50 = vpop.f32.mrf.mxu1 }
 0x2a4   :  { %v121_v49 = vpop.f32.mrf.mxu1 }
 0x2b0   :  { %v179_v0 = vpop.f32.mrf.mxu2 }
 0x2b8   :  { %v181_v44 = vpop.f32.mrf.mxu2 }
 0x2b9   :  { %v1429_v45 = vpack.i.bf16 %v181_v44, %v179_v0 }
 0x2bb   :  { %1430 = vrot.lane.b32.xlu2 %v1429_v45, %s1583_s13  ;;  %v1395_v45 = vld [vmem:[%s1964_s2 + $0x50] sm:$0xff] }
 0x2bc   :  { %523 = vmatpush.bf16.msra.mxu3 %v1395_v45 }
 0x2c0   :  { %v297_v46 = vpop.f32.mrf.mxu2 }
 0x2c8   :  { %v299_v47 = vpop.f32.mrf.mxu2 }
 0x2c9   :  { %v1439_v48 = vpack.i.bf16 %v299_v47, %v297_v46 }
 0x2cb   :  { %1440 = vrot.lane.b32.xlu2 %v1439_v48, %s1584_s14 }
 0x2d3   :  { %341 = vrot.lane.b32.xlu2 %v1645_v7, %s1582_s12 }
 0x2dd   :  { %v238_v52 = vpop.f32.mrf.mxu1 }
 0x2e5   :  { %v240_v53 = vpop.f32.mrf.mxu1 }
 0x2e6   :  { %v1434_v54 = vpack.i.bf16 %v240_v53, %v238_v52  ;;  %v1393_v52 = vld [vmem:[%s1964_s2 + $0x40] sm:$0xff] }
 0x2e8   :  { %1435 = vrot.lane.b32.xlu0 %v1434_v54, %s1585_s15 }
 0x2f0   :  { %334 = vrot.lane.b32.xlu0 %v1623_v1, %s1582_s12 }
 0x315   :  { %v1431_v55 = vpop.permute.xlu2 %1430 }
 0x316   :  { %v1433_v56 = vunpack.i.h.bf16 %v1431_v55  ;;  %v1432_v57 = vunpack.i.l.bf16 %v1431_v55 }
 0x318   :  { %v326_v62 = vsel %vm67_vm1, %v119_v50, %v1432_v57  ;;  %v327_v7 = vsel %vm67_vm1, %v121_v49, %v1433_v56  ;;  %v1394_v50 = vld [vmem:[%s1964_s2 + $0x48] sm:$0xff] }
 0x319   :  { %524 = vmatpush.bf16.msra.mxu3 %v1394_v50 }
 0x31d   :  { %525 = vmatpush.bf16.msra.mxu3 %v1393_v52 }
 0x325   :  { %v1441_v61 = vpop.permute.xlu2 %1440 }
 0x326   :  { %v1443_v6 = vunpack.i.h.bf16 %v1441_v61  ;;  %v1442_v8 = vunpack.i.l.bf16 %v1441_v61  ;;  %v414_v61 = vperm.slane %v1642_v5, 3 }
 0x32d   :  { %v342_v12 = vpop.permute.xlu2 %341 }
 0x35a   :  { %v1436_v58 = vpop.permute.xlu0 %1435 }
 0x35b   :  { %v1438_v59 = vunpack.i.h.bf16 %v1436_v58  ;;  %v1437_v60 = vunpack.i.l.bf16 %v1436_v58 }
 0x35d   :  { %v329_v63 = vsel %vm92_vm2, %v327_v7, %v1438_v59  ;;  %v328_v4 = vsel %vm92_vm2, %v326_v62, %v1437_v60 }
 0x35e   :  { %v332_v1 = vsel %vm330_vm3, %v329_v63, %v1443_v6  ;;  %v331_v9 = vsel %vm330_vm3, %v328_v4, %v1442_v8  ;;  %v417_v4 = vperm.slane %v1642_v5, 4 }
 0x35f   :  { %v333_v11 = vpack.c.bf16 %v332_v1, %v331_v9 }
 0x362   :  { %v335_v10 = vpop.permute.xlu0 %334 }
 0x363   :  { %354 = vmatpush.bf16.msra.mxu0 %v335_v10 }
 0x366   :  { %1273 = vmatmul.msk.bf16.vlgmr.msra.gmra.mxu0 %vm42_vm0, %v333_v11 }
 0x3e3   :  { %v356_v14 = vpop.f32.mrf.mxu0 }
 0x3e4   :  { %v357_v15 = vadd.f32 %v356_v14, %v342_v12  ;;  %v1391_v14 = vld [vmem:[%s1964_s2 + $0x30] sm:$0xff] }
 0x3e6   :  { %v361_v16 = vadd.f32 %v357_v15, %v1628_v2  ;;  %v1390_v15 = vld [vmem:[%s1964_s2 + $0x28] sm:$0xff] }
 0x3e8   :  { %v363_v17 = vsel %vm42_vm0, %v361_v16, 0.0 }
 0x3e9   :  { %364 = vadd.xlane.f32.xlu1 %v363_v17 }
 0x3eb   :  { %v358_v18 = vpop.f32.mrf.mxu0 }
 0x3ec   :  { %v359_v19 = vadd.f32 %v358_v18, %v342_v12  ;;  %v1392_v12 = vld [vmem:[%s1964_s2 + $0x38] sm:$0xff]  ;;  %v425_v18 = vperm.slane %v1642_v5, 1 }
 0x3ed   :  { %526 = vmatpush.bf16.msra.mxu3 %v1392_v12 }
 0x3ee   :  { %v362_v13 = vadd.f32 %v359_v19, %v1633_v3 }
 0x3f0   :  { %v366_v20 = vsel %vm42_vm0, %v362_v13, 0.0 }
 0x3f1   :  { %367 = vadd.xlane.f32.xlu0 %v366_v20  ;;  %527 = vmatpush.bf16.msra.mxu3 %v1391_v14 }
 0x3f5   :  { %528 = vmatpush.bf16.msra.mxu3 %v1390_v15 }
 0x45c   :  { %v365_v2 = vpop.xlane.xlu1 %364 }
 0x45d   :  { %v376_v29 = vmul.f32 %v1732_v28, %v365_v2 }
 0x45f   :  { %v378_v30 = vsub.f32 %v361_v16, %v376_v29  ;;  %v1389_v16 = vld [vmem:[%s1964_s2 + $0x20] sm:$0xff] }
 0x460   :  { %529 = vmatpush.bf16.msra.mxu3 %v1389_v16  ;;  %v1807_v16 = vld [vmem:[%s1965_s3 + $0x8] sm:$0xff] }
 0x461   :  { %v380_v31 = vmul.f32 %v378_v30, %v378_v30 }
 0x463   :  { %v382_v3 = vsel %vm42_vm0, %v380_v31, 0.0 }
 0x464   :  { %v368_v33 = vpop.xlane.xlu0 %367  ;;  %383 = vadd.xlane.f32.xlu2 %v382_v3 }
 0x465   :  { %v377_v34 = vmul.f32 %v1732_v28, %v368_v33 }
 0x467   :  { %v379_v35 = vsub.f32 %v362_v13, %v377_v34 }
 0x469   :  { %v381_v36 = vmul.f32 %v379_v35, %v379_v35 }
 0x46b   :  { %v385_v37 = vsel %vm42_vm0, %v381_v36, 0.0 }
 0x46c   :  { %386 = vadd.xlane.f32.xlu1 %v385_v37 }
 0x4d7   :  { %v384_v39 = vpop.xlane.xlu2 %383 }
 0x4d8   :  { %v388_v40 = vmul.f32 %v384_v39, %v1732_v28 }
 0x4da   :  { %v390_v41 = vadd.f32 1e-05, %v388_v40 }
 0x4dc   :  { %1493 = vrsqrt.f32 %v390_v41  ;;  %vm398_vm6 = vweird.f32 %v390_v41 }
 0x4df   :  { %v387_v0 = vpop.xlane.xlu1 %386 }
 0x4e0   :  { %v389_v44 = vmul.f32 %v387_v0, %v1732_v28  ;;  %v1784_v0 = vld [vmem:[%s1964_s2 + $0x68] sm:$0xff] }
 0x4e1   :  { %620 = vmatpush.bf16.msra.mxu2 %v1784_v0 }
 0x4e2   :  { %v1494_v46 = vpop.eup %1493  ;;  %v391_v47 = vadd.f32 1e-05, %v389_v44 }
 0x4e3   :  { %v393_v48 = vmul.f32 %v1494_v46, %v390_v41  ;;  %vm399_vm5 = vweird.f32 %v1494_v46 }
 0x4e4   :  { %1495 = vrsqrt.f32 %v391_v47  ;;  %vm400_vm7 = vmor %vm398_vm6, %vm399_vm5  ;;  %vm408_vm9 = vweird.f32 %v391_v47 }
 0x4e5   :  { %v394_v51 = vmul.f32 %v1494_v46, %v393_v48 }
 0x4e7   :  { %v395_v49 = vmul.f32 0.5, %v394_v51 }
 0x4e9   :  { %v396_v53 = vsub.f32 1.5, %v395_v49 }
 0x4ea   :  { %v1496_v54 = vpop.eup %1495 }
 0x4eb   :  { %v397_v55 = vmul.f32 %v1494_v46, %v396_v53  ;;  %v403_v56 = vmul.f32 %v1496_v54, %v391_v47  ;;  %vm409_vm8 = vweird.f32 %v1496_v54  ;;  %v1791_v47 = vld [vmem:[%s1964_s2 + $0x60] sm:$0xff] }
 0x4ec   :  { %vm410_vm10 = vmor %vm408_vm9, %vm409_vm8  ;;  %621 = vmatpush.bf16.msra.mxu2 %v1791_v47 }
 0x4ed   :  { %v404_v57 = vmul.f32 %v1496_v54, %v403_v56  ;;  %v401_v58 = vsel %vm400_vm7, %v1494_v46, %v397_v55 }
 0x4ee   :  { %v412_v62 = vmul.f32 %v401_v58, %v378_v30 }
 0x4ef   :  { %v405_v59 = vmul.f32 0.5, %v404_v57 }
 0x4f0   :  { %v415_v6 = vmul.f32 %v414_v61, %v412_v62 }
 0x4f1   :  { %v406_v60 = vsub.f32 1.5, %v405_v59 }
 0x4f2   :  { %v418_v9 = vadd.f32 %v417_v4, %v415_v6 }
 0x4f3   :  { %v407_v7 = vmul.f32 %v1496_v54, %v406_v60 }
 0x4f5   :  { %v411_v63 = vsel %vm410_vm10, %v1496_v54, %v407_v7  ;;  %v585_v7 = vperm.slane %v1642_v5, 5 }
 0x4f6   :  { %v413_v8 = vmul.f32 %v411_v63, %v379_v35 }
 0x4f8   :  { %v416_v1 = vmul.f32 %v414_v61, %v413_v8  ;;  %v588_v8 = vperm.slane %v1642_v5, 6  ;;  %v1810_v5 = vperm.slane %v1807_v16, 0 }
 0x4fa   :  { %v419_v10 = vadd.f32 %v417_v4, %v416_v1 }
 0x4fc   :  { %v420_v11 = vpack.c.bf16 %v419_v10, %v418_v9 }
 0x4fe   :  { %1282 = vmatmul.msk.bf16.vlgmr.msrb.gmra.mxu1 %vm42_vm0, %v420_v11 }
 0x57b   :  { %v450_v17 = vpop.f32.mrf.mxu1 }
 0x57c   :  { %v451_v19 = vadd.f32 %v450_v17, %v425_v18 }
 0x57e   :  { %v455_v21 = vmax.f32 %v451_v19, 0.0 }
 0x583   :  { %v452_v13 = vpop.f32.mrf.mxu1 }
 0x584   :  { %v453_v20 = vadd.f32 %v452_v13, %v425_v18 }
 0x586   :  { %v456_v22 = vmax.f32 %v453_v20, 0.0 }
 0x588   :  { %v457_v23 = vpack.c.bf16 %v456_v22, %v455_v21 }
 0x58a   :  { %530 = vmatmul.bf16.vlgmr.msra.gmra.mxu3 %v457_v23 }
 0x60d   :  { %v531_v25 = vpop.f32.mrf.mxu3 }
 0x60e   :  { %v537_v26 = vadd.f32 %v536_v24, %v531_v25 }
 0x610   :  { %v539_v2 = vadd.f32 %v537_v26, %v418_v9 }
 0x612   :  { %v541_v29 = vsel %vm42_vm0, %v539_v2, 0.0 }
 0x613   :  { %542 = vadd.xlane.f32.xlu1 %v541_v29 }
 0x615   :  { %v533_v30 = vpop.f32.mrf.mxu3 }
 0x616   :  { %v538_v31 = vadd.f32 %v536_v24, %v533_v30 }
 0x618   :  { %v540_v3 = vadd.f32 %v538_v31, %v419_v10 }
 0x61a   :  { %v544_v33 = vsel %vm42_vm0, %v540_v3, 0.0 }
 0x61b   :  { %545 = vadd.xlane.f32.xlu1 %v544_v33 }
 0x686   :  { %v543_v34 = vpop.xlane.xlu1 %542 }
 0x687   :  { %v547_v35 = vmul.f32 %v543_v34, %v1732_v28 }
 0x689   :  { %v549_v36 = vsub.f32 %v539_v2, %v547_v35 }
 0x68b   :  { %v551_v37 = vmul.f32 %v549_v36, %v549_v36 }
 0x68d   :  { %v553_v38 = vsel %vm42_vm0, %v551_v37, 0.0 }
 0x68e   :  { %554 = vadd.xlane.f32.xlu1 %v553_v38  ;;  %v546_v39 = vpop.xlane.xlu1 %545 }
 0x68f   :  { %v548_v40 = vmul.f32 %v546_v39, %v1732_v28 }
 0x691   :  { %v550_v41 = vsub.f32 %v540_v3, %v548_v40 }
 0x693   :  { %v552_v42 = vmul.f32 %v550_v41, %v550_v41 }
 0x695   :  { %v556_v43 = vsel %vm42_vm0, %v552_v42, 0.0 }
 0x696   :  { %557 = vadd.xlane.f32.xlu1 %v556_v43 }
 0x701   :  { %v555_v44 = vpop.xlane.xlu1 %554 }
 0x702   :  { %v559_v45 = vmul.f32 %v555_v44, %v1732_v28 }
 0x704   :  { %v561_v46 = vadd.f32 1e-05, %v559_v45 }
 0x706   :  { %1497 = vrsqrt.f32 %v561_v46  ;;  %vm569_vm12 = vweird.f32 %v561_v46 }
 0x709   :  { %v558_v48 = vpop.xlane.xlu1 %557 }
 0x70a   :  { %v560_v50 = vmul.f32 %v558_v48, %v1732_v28 }
 0x70c   :  { %v1498_v51 = vpop.eup %1497  ;;  %v562_v49 = vadd.f32 1e-05, %v560_v50 }
 0x70d   :  { %v564_v52 = vmul.f32 %v1498_v51, %v561_v46  ;;  %vm570_vm11 = vweird.f32 %v1498_v51 }
 0x70e   :  { %1499 = vrsqrt.f32 %v562_v49  ;;  %vm571_vm13 = vmor %vm569_vm12, %vm570_vm11  ;;  %vm579_vm15 = vweird.f32 %v562_v49 }
 0x70f   :  { %v565_v53 = vmul.f32 %v1498_v51, %v564_v52 }
 0x711   :  { %v566_v54 = vmul.f32 0.5, %v565_v53 }
 0x713   :  { %v567_v55 = vsub.f32 1.5, %v566_v54 }
 0x714   :  { %v1500_v56 = vpop.eup %1499 }
 0x715   :  { %v568_v57 = vmul.f32 %v1498_v51, %v567_v55  ;;  %v574_v58 = vmul.f32 %v1500_v56, %v562_v49  ;;  %vm580_vm14 = vweird.f32 %v1500_v56 }
 0x716   :  { %vm581_vm4 = vmor %vm579_vm15, %vm580_vm14 }
 0x717   :  { %v575_v59 = vmul.f32 %v1500_v56, %v574_v58  ;;  %v572_v60 = vsel %vm571_vm13, %v1498_v51, %v568_v57 }
 0x718   :  { %v583_v63 = vmul.f32 %v572_v60, %v549_v36 }
 0x719   :  { %v576_v61 = vmul.f32 0.5, %v575_v59 }
 0x71a   :  { %v586_v1 = vmul.f32 %v585_v7, %v583_v63 }
 0x71b   :  { %v577_v62 = vsub.f32 1.5, %v576_v61 }
 0x71c   :  { %v1797_v11 = vadd.f32 %v588_v8, %v586_v1 }
 0x71d   :  { %v578_v4 = vmul.f32 %v1500_v56, %v577_v62 }
 0x71f   :  { %v582_v6 = vsel %vm581_vm4, %v1500_v56, %v578_v4 }
 0x720   :  { %v584_v9 = vmul.f32 %v582_v6, %v550_v41 }
 0x722   :  { %v587_v10 = vmul.f32 %v585_v7, %v584_v9 }
 0x724   :  { %v1799_v12 = vadd.f32 %v588_v8, %v587_v10 }
 0x726   :  { %v597_v14 = vpack.c.bf16 %v1799_v12, %v1797_v11 }
 0x728   :  { %1324 = vmatmul.msk.bf16.vlgmr.msra.gmra.mxu2 %vm42_vm0, %v597_v14 }
 0x7ab   :  { %v623_v15 = vpop.f32.mrf.mxu2 }
 0x7ac   :  { %v624_v18 = vadd.f32 %v623_v15, %v1810_v5 }
 0x7ae   :  { %v628_v21 = vmul.f32 0.35355338, %v624_v18 }
 0x7b3   :  { %v625_v17 = vpop.f32.mrf.mxu2 }
 0x7b4   :  { %v626_v19 = vadd.f32 %v625_v17, %v1810_v5 }
 0x7b6   :  { %v1814_v13 = vpack.c.bf16 %v626_v19, %v624_v18  ;;  %v629_v20 = vmul.f32 0.35355338, %v626_v19 }
 0x7b8   :  { %670 = vrot.lane.b32.xlu1 %v1814_v13, %s1578_s5  ;;  %693 = vrot.lane.b32.xlu2 %v1814_v13, %s1572_s25  ;;  %v630_v22 = vpack.c.bf16 %v629_v20, %v628_v21  ;;  %s1244_s25 = sshll.u32 %s1966_s4, 4  ;;  %s1245_s25 = int_to_ptr.hbm [resolvable:$true] %s1244_s25 }
 0x7b9   :  { %633 = vrot.lane.b32.xlu0 %v1814_v13, %s1571_s0 }
 0x7c1   :  { %691 = vrot.lane.b32.xlu0 %v630_v22, %s1575_s28 }
 0x7c9   :  { %752 = vrot.lane.b32.xlu0 %v1814_v13, %s1576_s29 }
 0x7d1   :  { %750 = vrot.lane.b32.xlu0 %v630_v22, %s1577_s30 }
 0x812   :  { %v694_v23 = vpop.permute.xlu2 %693 }
 0x813   :  { %v699_v24 = vsel %vm67_vm1, %v694_v23, 0 }
 0x814   :  { %708 = vmatpush.bf16.xpose.msrb.mxu2 %v699_v24 }
 0x82a   :  { %v671_v25 = vpop.permute.xlu1 %670 }
 0x82b   :  { %v634_v26 = vpop.permute.xlu0 %633  ;;  %683 = vmatpush.bf16.msra.mxu1 %v671_v25 }
 0x82c   :  { %v639_v2 = vsel %vm67_vm1, %v634_v26, 0 }
 0x82d   :  { %648 = vmatpush.bf16.xpose.msrb.mxu0 %v639_v2 }
 0x833   :  { %v692_v29 = vpop.permute.xlu0 %691 }
 0x834   :  { %1325 = vmatmul.msk.bf16.vlgmr.msrb.gmra.mxu0 %vm67_vm1, %v630_v22  ;;  %1327 = vmatmul.msk.bf16.vlgmr.msrb.gmra.mxu2 %vm67_vm1, %v692_v29 }
 0x83b   :  { %v753_v30 = vpop.permute.xlu0 %752 }
 0x83c   :  { %v758_v31 = vsel %vm67_vm1, %v753_v30, 0 }
 0x83d   :  { %767 = vmatpush.bf16.xpose.msrb.mxu1 %v758_v31 }
 0x843   :  { %v751_v7 = vpop.permute.xlu0 %750 }
 0x8b1   :  { %v650_v3 = vpop.f32.mrf.mxu0 }
 0x8b2   :  { %v651_v33 = vadd.f32 %v650_v3, %v1675_v27 }
 0x8b4   :  { %v655_v34 = vmul.f32 1.442695, %v651_v33 }
 0x8b6   :  { %1501 = vpow2.f32 %v655_v34 }
 0x8b7   :  { %v710_v35 = vpop.f32.mrf.mxu2 }
 0x8b8   :  { %v711_v50 = vadd.f32 %v710_v35, %v1675_v27 }
 0x8b9   :  { %v652_v36 = vpop.f32.mrf.mxu0 }
 0x8ba   :  { %v653_v37 = vadd.f32 %v652_v36, %v1681_v32  ;;  %v715_v51 = vmul.f32 1.442695, %v711_v50 }
 0x8bc   :  { %v1502_v38 = vpop.eup %1501  ;;  %v657_v39 = vmul.f32 1.442695, %v653_v37 }
 0x8bd   :  { %v659_v40 = vsel %vm92_vm2, %v1502_v38, 0.0 }
 0x8be   :  { %1503 = vpow2.f32 %v657_v39  ;;  %660 = vadd.xlane.f32.xlu2 %v659_v40 }
 0x8bf   :  { %v712_v41 = vpop.f32.mrf.mxu2 }
 0x8c0   :  { %v713_v42 = vadd.f32 %v712_v41, %v1681_v32 }
 0x8c2   :  { %v717_v43 = vmul.f32 1.442695, %v713_v42 }
 0x8c4   :  { %v1504_v44 = vpop.eup %1503  ;;  %1505 = vpow2.f32 %v717_v43 }
 0x8c5   :  { %v662_v45 = vsel %vm92_vm2, %v1504_v44, 0.0  ;;  %1507 = vpow2.f32 %v715_v51 }
 0x8c6   :  { %663 = vadd.xlane.f32.xlu1 %v662_v45 }
 0x8ca   :  { %v1506_v46 = vpop.eup %1505 }
 0x8cb   :  { %v722_v48 = vsel %vm92_vm2, %v1506_v46, 0.0  ;;  %v1508_v49 = vpop.eup %1507 }
 0x8cc   :  { %723 = vadd.xlane.f32.xlu0 %v722_v48  ;;  %v719_v52 = vsel %vm92_vm2, %v1508_v49, 0.0 }
 0x8d6   :  { %811 = vrot.lane.b32.xlu2 %v1814_v13, %s1574_s27 }
 0x8df   :  { %809 = vrot.lane.b32.xlu1 %v630_v22, %s1573_s26  ;;  %s1588_s26 = smov 128  }
 0x8e7   :  { %730 = vrot.lane.b32.xlu1 %v1814_v13, %s1579_s1 }
 0x8ff   :  { %720 = vadd.xlane.f32.xlu2 %v719_v52 }
 0x931   :  { %v661_v53 = vpop.xlane.xlu2 %660 }
 0x932   :  { %1509 = vrcp.f32 %v661_v53 }
 0x938   :  { %v1510_v57 = vpop.eup %1509 }
 0x939   :  { %v664_v54 = vpop.xlane.xlu1 %663  ;;  %v812_v55 = vpop.permute.xlu2 %811  ;;  %v667_v59 = vmul.f32 %v1510_v57, %v1502_v38 }
 0x93a   :  { %1511 = vrcp.f32 %v664_v54  ;;  %v817_v56 = vsel %vm67_vm1, %v812_v55, 0 }
 0x93b   :  { %826 = vmatpush.bf16.xpose.msra.mxu2 %v817_v56 }
 0x93f   :  { %v724_v4 = vpop.xlane.xlu0 %723 }
 0x940   :  { %v1512_v58 = vpop.eup %1511  ;;  %1513 = vrcp.f32 %v724_v4 }
 0x941   :  { %v668_v60 = vmul.f32 %v1512_v58, %v1504_v44 }
 0x943   :  { %v669_v61 = vpack.c.bf16 %v668_v60, %v667_v59 }
 0x945   :  { %1326 = vmatmul.msk.bf16.vlgmr.msra.gmra.mxu1 %vm92_vm2, %v669_v61 }
 0x946   :  { %v1514_v8 = vpop.eup %1513 }
 0x947   :  { %v728_v9 = vmul.f32 %v1514_v8, %v1506_v46 }
 0x951   :  { %v810_v62 = vpop.permute.xlu1 %809 }
 0x952   :  { %1331 = vmatmul.msk.bf16.vlgmr.msra.gmra.mxu2 %vm67_vm1, %v810_v62 }
 0x955   :  { %1329 = vmatmul.msk.bf16.vlgmr.msrb.gmra.mxu1 %vm67_vm1, %v751_v7 }
 0x959   :  { %v731_v63 = vpop.permute.xlu1 %730 }
 0x95a   :  { %743 = vmatpush.bf16.msra.mxu0 %v731_v63 }
 0x972   :  { %v721_v6 = vpop.xlane.xlu2 %720 }
 0x973   :  { %1515 = vrcp.f32 %v721_v6 }
 0x979   :  { %v1516_v1 = vpop.eup %1515 }
 0x97a   :  { %v727_v10 = vmul.f32 %v1516_v1, %v1508_v49 }
 0x97c   :  { %v729_v14 = vpack.c.bf16 %v728_v9, %v727_v10 }
 0x97e   :  { %1328 = vmatmul.msk.bf16.vlgmr.msra.gmra.mxu0 %vm92_vm2, %v729_v14 }
 0x9c2   :  { %v1849_v15 = vpop.f32.mrf.mxu1 }
 0x9ca   :  { %v1851_v17 = vpop.f32.mrf.mxu1 }
 0x9d2   :  { %v769_v18 = vpop.f32.mrf.mxu1 }
 0x9d3   :  { %v770_v19 = vadd.f32 %v769_v18, %v1675_v27 }
 0x9d5   :  { %v774_v20 = vmul.f32 1.442695, %v770_v19  ;;  %v828_v21 = vpop.f32.mrf.mxu2 }
 0x9d6   :  { %v829_v22 = vadd.f32 %v828_v21, %v1675_v27 }
 0x9d7   :  { %1517 = vpow2.f32 %v774_v20 }
 0x9d8   :  { %v833_v23 = vmul.f32 1.442695, %v829_v22 }
 0x9da   :  { %1519 = vpow2.f32 %v833_v23  ;;  %v771_v24 = vpop.f32.mrf.mxu1 }
 0x9db   :  { %v772_v25 = vadd.f32 %v771_v24, %v1681_v32 }
 0x9dd   :  { %v1518_v26 = vpop.eup %1517  ;;  %v776_v2 = vmul.f32 1.442695, %v772_v25  ;;  %v830_v29 = vpop.f32.mrf.mxu2 }
 0x9de   :  { %v831_v30 = vadd.f32 %v830_v29, %v1681_v32  ;;  %v778_v31 = vsel %vm92_vm2, %v1518_v26, 0.0 }
 0x9df   :  { %1521 = vpow2.f32 %v776_v2  ;;  %779 = vadd.xlane.f32.xlu1 %v778_v31 }
 0x9e0   :  { %v1520_v3 = vpop.eup %1519  ;;  %v835_v33 = vmul.f32 1.442695, %v831_v30 }
 0x9e1   :  { %v837_v34 = vsel %vm92_vm2, %v1520_v3, 0.0 }
 0x9e2   :  { %838 = vadd.xlane.f32.xlu0 %v837_v34  ;;  %1523 = vpow2.f32 %v835_v33 }
 0x9e5   :  { %v1522_v27 = vpop.eup %1521 }
 0x9e6   :  { %v781_v35 = vsel %vm92_vm2, %v1522_v27, 0.0 }
 0x9e7   :  { %782 = vadd.xlane.f32.xlu2 %v781_v35 }
 0x9e8   :  { %v1524_v36 = vpop.eup %1523 }
 0x9e9   :  { %v840_v37 = vsel %vm92_vm2, %v1524_v36, 0.0 }
 0x9ef   :  { %841 = vadd.xlane.f32.xlu2 %v840_v37 }
 0x9f6   :  { %789 = vrot.lane.b32.xlu0 %v1814_v13, %s1581_s11 }
 0x9f8   :  { %848 = vrot.lane.b32.xlu1 %v1814_v13, %s1580_s10 }
 0x9fb   :  { %v745_v32 = vpop.f32.mrf.mxu0 }
 0xa03   :  { %v747_v38 = vpop.f32.mrf.mxu0 }
 0xa04   :  { %v1444_v39 = vpack.i.bf16 %v747_v38, %v745_v32 }
 0xa06   :  { %1445 = vrot.lane.b32.xlu0 %v1444_v39, %s1583_s13 }
 0xa07   :  { %901 = vrot.lane.b32.xlu2 %v1784_v0, %s1582_s12 }
 0xa0f   :  { %899 = vrot.lane.b32.xlu2 %v1791_v47, %s1582_s12 }
 0xa52   :  { %v780_v41 = vpop.xlane.xlu1 %779 }
 0xa55   :  { %v839_v42 = vpop.xlane.xlu0 %838 }
 0xa5a   :  { %v783_v40 = vpop.xlane.xlu2 %782 }
 0xa5b   :  { %1525 = vrcp.f32 %v783_v40  ;;  %v1399_v40 = vld [vmem:[%s1964_s2 + $0x70] sm:$0xff] }
 0xa5c   :  { %1527 = vrcp.f32 %v780_v41 }
 0xa5d   :  { %1529 = vrcp.f32 %v839_v42  ;;  %v1408_v42 = vld [vmem:[%s1964_s2 + $0xb8] sm:$0xff] }
 0xa5e   :  { %1080 = vmatpush.bf16.msrb.mxu2 %v1408_v42 }
 0xa61   :  { %v1526_v44 = vpop.eup %1525 }
 0xa62   :  { %v842_v43 = vpop.xlane.xlu2 %841  ;;  %v1528_v13 = vpop.eup %1527  ;;  %v787_v45 = vmul.f32 %v1526_v44, %v1522_v27 }
 0xa63   :  { %1531 = vrcp.f32 %v842_v43  ;;  %v1530_v46 = vpop.eup %1529  ;;  %v786_v48 = vmul.f32 %v1528_v13, %v1518_v26  ;;  %v1407_v13 = vld [vmem:[%s1964_s2 + $0xb0] sm:$0xff] }
 0xa64   :  { %v845_v0 = vmul.f32 %v1530_v46, %v1520_v3  ;;  %1081 = vmatpush.bf16.msrb.mxu2 %v1407_v13 }
 0xa65   :  { %v788_v49 = vpack.c.bf16 %v787_v45, %v786_v48 }
 0xa68   :  { %v790_v50 = vpop.permute.xlu0 %789 }
 0xa69   :  { %v1532_v51 = vpop.eup %1531  ;;  %802 = vmatpush.bf16.msrb.mxu3 %v790_v50  ;;  %v1406_v50 = vld [vmem:[%s1964_s2 + $0xa8] sm:$0xff] }
 0xa6a   :  { %v846_v52 = vmul.f32 %v1532_v51, %v1524_v36  ;;  %v849_v47 = vpop.permute.xlu1 %848  ;;  %v902_v54 = vpop.permute.xlu2 %901  ;;  %1082 = vmatpush.bf16.msrb.mxu2 %v1406_v50 }
 0xa6b   :  { %861 = vmatpush.bf16.msrb.mxu0 %v849_v47  ;;  %918 = vmatpush.bf16.msra.mxu1 %v902_v54 }
 0xa6c   :  { %v847_v53 = vpack.c.bf16 %v846_v52, %v845_v0  ;;  %1330 = vmatmul.msk.bf16.vlgmr.msrb.gmra.mxu3 %vm92_vm2, %v788_v49  ;;  %v1405_v49 = vld [vmem:[%s1964_s2 + $0xa0] sm:$0xff] }
 0xa6e   :  { %1332 = vmatmul.msk.bf16.vlgmr.msrb.gmra.mxu0 %vm92_vm2, %v847_v53  ;;  %1083 = vmatpush.bf16.msrb.mxu2 %v1405_v49 }
 0xa72   :  { %v900_v61 = vpop.permute.xlu2 %899 }
 0xa73   :  { %919 = vmatpush.bf16.msra.mxu1 %v900_v61 }
 0xa78   :  { %v1446_v62 = vpop.permute.xlu0 %1445 }
 0xa79   :  { %v1448_v7 = vunpack.i.h.bf16 %v1446_v62  ;;  %v1447_v63 = vunpack.i.l.bf16 %v1446_v62 }
 0xa7b   :  { %v893_v9 = vsel %vm67_vm1, %v1851_v17, %v1448_v7  ;;  %v892_v10 = vsel %vm67_vm1, %v1849_v15, %v1447_v63  ;;  %v975_v7 = vperm.slane %v1807_v16, 4 }
 0xaeb   :  { %v863_v55 = vpop.f32.mrf.mxu0 }
 0xaef   :  { %v804_v56 = vpop.f32.mrf.mxu3 }
 0xaf3   :  { %v865_v57 = vpop.f32.mrf.mxu0 }
 0xaf4   :  { %v1454_v58 = vpack.i.bf16 %v865_v57, %v863_v55 }
 0xaf6   :  { %1455 = vrot.lane.b32.xlu0 %v1454_v58, %s1584_s14 }
 0xaf7   :  { %v806_v59 = vpop.f32.mrf.mxu3 }
 0xaf8   :  { %v1449_v60 = vpack.i.bf16 %v806_v59, %v804_v56  ;;  %v972_v59 = vperm.slane %v1807_v16, 3 }
 0xafa   :  { %1450 = vrot.lane.b32.xlu1 %v1449_v60, %s1585_s15 }
 0xb02   :  { %906 = vrot.lane.b32.xlu1 %v1810_v5, %s1582_s12 }
 0xb68   :  { %v1456_v4 = vpop.permute.xlu0 %1455 }
 0xb69   :  { %v1458_v14 = vunpack.i.h.bf16 %v1456_v4  ;;  %v1457_v18 = vunpack.i.l.bf16 %v1456_v4 }
 0xb6c   :  { %v1451_v6 = vpop.permute.xlu1 %1450 }
 0xb6d   :  { %v1453_v8 = vunpack.i.h.bf16 %v1451_v6  ;;  %v1452_v1 = vunpack.i.l.bf16 %v1451_v6 }
 0xb6f   :  { %v895_v19 = vsel %vm92_vm2, %v893_v9, %v1453_v8  ;;  %v894_v5 = vsel %vm92_vm2, %v892_v10, %v1452_v1  ;;  %v1404_v10 = vld [vmem:[%s1964_s2 + $0x98] sm:$0xff] }
 0xb70   :  { %v896_v20 = vsel %vm330_vm3, %v894_v5, %v1457_v18  ;;  %v897_v21 = vsel %vm330_vm3, %v895_v19, %v1458_v14  ;;  %1084 = vmatpush.bf16.msrb.mxu2 %v1404_v10  ;;  %v1403_v14 = vld [vmem:[%s1964_s2 + $0x90] sm:$0xff]  ;;  %v1402_v18 = vld [vmem:[%s1964_s2 + $0x88] sm:$0xff]  ;;  %v1401_v19 = vld [vmem:[%s1964_s2 + $0x80] sm:$0xff] }
 0xb71   :  { %v898_v22 = vpack.c.bf16 %v897_v21, %v896_v20  ;;  %v983_v20 = vperm.slane %v1807_v16, 1 }
 0xb73   :  { %1333 = vmatmul.msk.bf16.vlgmr.msra.gmra.mxu1 %vm42_vm0, %v898_v22 }
 0xb74   :  { %v907_v23 = vpop.permute.xlu1 %906  ;;  %1085 = vmatpush.bf16.msrb.mxu2 %v1403_v14 }
 0xb78   :  { %1086 = vmatpush.bf16.msrb.mxu2 %v1402_v18 }
 0xb7c   :  { %1087 = vmatpush.bf16.msrb.mxu2 %v1401_v19 }
 0xbf0   :  { %v921_v24 = vpop.f32.mrf.mxu1 }
 0xbf1   :  { %v922_v25 = vadd.f32 %v921_v24, %v907_v23 }
 0xbf3   :  { %v926_v17 = vadd.f32 %v922_v25, %v1797_v11 }
 0xbf5   :  { %v928_v15 = vsel %vm42_vm0, %v926_v17, 0.0 }
 0xbf6   :  { %929 = vadd.xlane.f32.xlu0 %v928_v15  ;;  %v1094_v15 = vperm.slane %v1807_v16, 2 }
 0xbf8   :  { %v923_v26 = vpop.f32.mrf.mxu1 }
 0xbf9   :  { %v924_v2 = vadd.f32 %v923_v26, %v907_v23 }
 0xbfb   :  { %v927_v29 = vadd.f32 %v924_v2, %v1799_v12  ;;  %v1400_v12 = vld [vmem:[%s1964_s2 + $0x78] sm:$0xff] }
 0xbfc   :  { %1005 = vmatpush.bf16.msra.mxu3 %v1400_v12 }
 0xbfd   :  { %v931_v30 = vsel %vm42_vm0, %v927_v29, 0.0 }
 0xbfe   :  { %932 = vadd.xlane.f32.xlu2 %v931_v30 }
 0xc00   :  { %1006 = vmatpush.bf16.msra.mxu3 %v1399_v40 }
 0xc69   :  { %v930_v31 = vpop.xlane.xlu0 %929 }
 0xc6a   :  { %v934_v3 = vmul.f32 %v930_v31, %v1732_v28 }
 0xc6c   :  { %v936_v33 = vsub.f32 %v926_v17, %v934_v3 }
 0xc6e   :  { %v938_v34 = vmul.f32 %v936_v33, %v936_v33 }
 0xc70   :  { %v940_v27 = vsel %vm42_vm0, %v938_v34, 0.0 }
 0xc71   :  { %v933_v35 = vpop.xlane.xlu2 %932  ;;  %941 = vadd.xlane.f32.xlu1 %v940_v27 }
 0xc72   :  { %v935_v11 = vmul.f32 %v933_v35, %v1732_v28 }
 0xc74   :  { %v937_v36 = vsub.f32 %v927_v29, %v935_v11 }
 0xc76   :  { %v939_v37 = vmul.f32 %v937_v36, %v937_v36 }
 0xc78   :  { %v943_v32 = vsel %vm42_vm0, %v939_v37, 0.0 }
 0xc79   :  { %944 = vadd.xlane.f32.xlu0 %v943_v32 }
 0xce4   :  { %v942_v38 = vpop.xlane.xlu1 %941 }
 0xce5   :  { %v946_v39 = vmul.f32 %v942_v38, %v1732_v28 }
 0xce7   :  { %v948_v41 = vadd.f32 1e-05, %v946_v39 }
 0xce9   :  { %1533 = vrsqrt.f32 %v948_v41  ;;  %vm956_vm2 = vweird.f32 %v948_v41 }
 0xcec   :  { %v945_v43 = vpop.xlane.xlu0 %944 }
 0xced   :  { %v947_v44 = vmul.f32 %v945_v43, %v1732_v28 }
 0xcef   :  { %v1534_v45 = vpop.eup %1533  ;;  %v949_v46 = vadd.f32 1e-05, %v947_v44 }
 0xcf0   :  { %v951_v48 = vmul.f32 %v1534_v45, %v948_v41  ;;  %vm957_vm1 = vweird.f32 %v1534_v45 }
 0xcf1   :  { %1535 = vrsqrt.f32 %v949_v46  ;;  %vm958_vm3 = vmor %vm956_vm2, %vm957_vm1  ;;  %vm966_vm6 = vweird.f32 %v949_v46 }
 0xcf2   :  { %v952_v51 = vmul.f32 %v1534_v45, %v951_v48 }
 0xcf4   :  { %v953_v0 = vmul.f32 0.5, %v952_v51 }
 0xcf6   :  { %v954_v52 = vsub.f32 1.5, %v953_v0 }
 0xcf7   :  { %v1536_v47 = vpop.eup %1535 }
 0xcf8   :  { %v955_v53 = vmul.f32 %v1534_v45, %v954_v52  ;;  %v961_v54 = vmul.f32 %v1536_v47, %v949_v46  ;;  %vm967_vm5 = vweird.f32 %v1536_v47 }
 0xcf9   :  { %vm968_vm7 = vmor %vm966_vm6, %vm967_vm5 }
 0xcfa   :  { %v962_v55 = vmul.f32 %v1536_v47, %v961_v54  ;;  %v959_v56 = vsel %vm958_vm3, %v1534_v45, %v955_v53  ;;  %v1143_v53 = vperm.slane %v1807_v16, 5 }
 0xcfb   :  { %v970_v60 = vmul.f32 %v959_v56, %v936_v33 }
 0xcfc   :  { %v963_v57 = vmul.f32 0.5, %v962_v55 }
 0xcfd   :  { %v973_v63 = vmul.f32 %v972_v59, %v970_v60 }
 0xcfe   :  { %v964_v58 = vsub.f32 1.5, %v963_v57  ;;  %v1146_v57 = vperm.slane %v1807_v16, 6 }
 0xcff   :  { %v976_v8 = vadd.f32 %v975_v7, %v973_v63 }
 0xd00   :  { %v965_v61 = vmul.f32 %v1536_v47, %v964_v58 }
 0xd02   :  { %v969_v62 = vsel %vm968_vm7, %v1536_v47, %v965_v61 }
 0xd03   :  { %v971_v4 = vmul.f32 %v969_v62, %v937_v36 }
 0xd05   :  { %v974_v6 = vmul.f32 %v972_v59, %v971_v4 }
 0xd07   :  { %v977_v1 = vadd.f32 %v975_v7, %v974_v6 }
 0xd09   :  { %v978_v9 = vpack.c.bf16 %v977_v1, %v976_v8 }
 0xd0b   :  { %1342 = vmatmul.msk.bf16.vlgmr.msra.gmra.mxu3 %vm42_vm0, %v978_v9 }
 0xd8e   :  { %v1008_v5 = vpop.f32.mrf.mxu3 }
 0xd8f   :  { %v1009_v21 = vadd.f32 %v1008_v5, %v983_v20 }
 0xd91   :  { %v1013_v24 = vmax.f32 %v1009_v21, 0.0 }
 0xd96   :  { %v1010_v22 = vpop.f32.mrf.mxu3 }
 0xd97   :  { %v1011_v23 = vadd.f32 %v1010_v22, %v983_v20 }
 0xd99   :  { %v1014_v25 = vmax.f32 %v1011_v23, 0.0  ;;  %v1410_v23 = vld [vmem:[%s1964_s2 + $0xc8] sm:$0xff] }
 0xd9a   :  { %1228 = vmatpush.bf16.msra.mxu0 %v1410_v23 }
 0xd9b   :  { %v1015_v17 = vpack.c.bf16 %v1014_v25, %v1013_v24 }
 0xd9d   :  { %1088 = vmatmul.bf16.vlgmr.msrb.gmra.mxu2 %v1015_v17  ;;  %v1409_v17 = vld [vmem:[%s1964_s2 + $0xc0] sm:$0xff] }
 0xd9e   :  { %1229 = vmatpush.bf16.msra.mxu0 %v1409_v17 }
 0xe20   :  { %v1089_v26 = vpop.f32.mrf.mxu2 }
 0xe21   :  { %v1095_v2 = vadd.f32 %v1094_v15, %v1089_v26 }
 0xe23   :  { %v1097_v29 = vadd.f32 %v1095_v2, %v976_v8 }
 0xe25   :  { %v1099_v30 = vsel %vm42_vm0, %v1097_v29, 0.0 }
 0xe26   :  { %1100 = vadd.xlane.f32.xlu2 %v1099_v30 }
 0xe28   :  { %v1091_v31 = vpop.f32.mrf.mxu2 }
 0xe29   :  { %v1096_v3 = vadd.f32 %v1094_v15, %v1091_v31 }
 0xe2b   :  { %v1098_v33 = vadd.f32 %v1096_v3, %v977_v1 }
 0xe2d   :  { %v1102_v34 = vsel %vm42_vm0, %v1098_v33, 0.0 }
 0xe2e   :  { %1103 = vadd.xlane.f32.xlu1 %v1102_v34 }
 0xe99   :  { %v1101_v27 = vpop.xlane.xlu2 %1100 }
 0xe9a   :  { %v1105_v35 = vmul.f32 %v1101_v27, %v1732_v28 }
 0xe9c   :  { %v1107_v11 = vsub.f32 %v1097_v29, %v1105_v35 }
 0xe9e   :  { %v1109_v36 = vmul.f32 %v1107_v11, %v1107_v11 }
 0xea0   :  { %v1111_v37 = vsel %vm42_vm0, %v1109_v36, 0.0 }
 0xea1   :  { %1112 = vadd.xlane.f32.xlu0 %v1111_v37  ;;  %v1104_v32 = vpop.xlane.xlu1 %1103  ;;  %v1375_v37 = vld [vmem:[%s1965_s3 + $0x10] sm:$0xff]  ;;  %s1587_s3 = smov [#allocation2]  }
 0xea2   :  { %v1106_v12 = vmul.f32 %v1104_v32, %v1732_v28  ;;  %s1242_s8 = sshll.u32 %s1587_s3, 4  ;;  %s1243_s8 = int_to_ptr.vmem [resolvable:$true] %s1242_s8 }
 0xea4   :  { %v1108_v38 = vsub.f32 %v1098_v33, %v1106_v12 }
 0xea6   :  { %v1110_v39 = vmul.f32 %v1108_v38, %v1108_v38 }
 0xea8   :  { %v1114_v40 = vsel %vm42_vm0, %v1110_v39, 0.0 }
 0xea9   :  { %1115 = vadd.xlane.f32.xlu2 %v1114_v40 }
 0xf14   :  { %v1113_v41 = vpop.xlane.xlu0 %1112 }
 0xf15   :  { %v1117_v42 = vmul.f32 %v1113_v41, %v1732_v28 }
 0xf17   :  { %v1119_v43 = vadd.f32 1e-05, %v1117_v42  ;;  %v1198_v42 = vperm.slane %v1375_v37, 1 }
 0xf19   :  { %1537 = vrsqrt.f32 %v1119_v43  ;;  %vm1127_vm9 = vweird.f32 %v1119_v43 }
 0xf1c   :  { %v1116_v44 = vpop.xlane.xlu2 %1115 }
 0xf1d   :  { %v1118_v13 = vmul.f32 %v1116_v44, %v1732_v28 }
 0xf1f   :  { %v1538_v45 = vpop.eup %1537  ;;  %v1120_v46 = vadd.f32 1e-05, %v1118_v13 }
 0xf20   :  { %v1122_v48 = vmul.f32 %v1538_v45, %v1119_v43  ;;  %vm1128_vm8 = vweird.f32 %v1538_v45 }
 0xf21   :  { %1539 = vrsqrt.f32 %v1120_v46  ;;  %vm1129_vm10 = vmor %vm1127_vm9, %vm1128_vm8  ;;  %vm1137_vm12 = vweird.f32 %v1120_v46 }
 0xf22   :  { %v1123_v50 = vmul.f32 %v1538_v45, %v1122_v48 }
 0xf24   :  { %v1124_v51 = vmul.f32 0.5, %v1123_v50  ;;  %v1206_v50 = vperm.slane %v1375_v37, 2 }
 0xf26   :  { %v1125_v0 = vsub.f32 1.5, %v1124_v51 }
 0xf27   :  { %v1540_v49 = vpop.eup %1539 }
 0xf28   :  { %v1126_v52 = vmul.f32 %v1538_v45, %v1125_v0  ;;  %v1132_v47 = vmul.f32 %v1540_v49, %v1120_v46  ;;  %vm1138_vm11 = vweird.f32 %v1540_v49 }
 0xf29   :  { %vm1139_vm13 = vmor %vm1137_vm12, %vm1138_vm11 }
 0xf2a   :  { %v1133_v54 = vmul.f32 %v1540_v49, %v1132_v47  ;;  %v1130_v55 = vsel %vm1129_vm10, %v1538_v45, %v1126_v52 }
 0xf2b   :  { %v1141_v56 = vmul.f32 %v1130_v55, %v1107_v11 }
 0xf2c   :  { %v1134_v58 = vmul.f32 0.5, %v1133_v54 }
 0xf2d   :  { %v1144_v59 = vmul.f32 %v1143_v53, %v1141_v56 }
 0xf2e   :  { %v1135_v60 = vsub.f32 1.5, %v1134_v58 }
 0xf2f   :  { %v1147_v61 = vadd.f32 %v1146_v57, %v1144_v59 }
 0xf30   :  { %v1136_v62 = vmul.f32 %v1540_v49, %v1135_v60 }
 0xf31   :  { %v1151_v7 = vsel %vm42_vm0, %v1147_v61, 0.0 }
 0xf32   :  { %1152 = vadd.xlane.f32.xlu1 %v1151_v7  ;;  %v1140_v63 = vsel %vm1139_vm13, %v1540_v49, %v1136_v62 }
 0xf33   :  { %v1142_v4 = vmul.f32 %v1140_v63, %v1108_v38  ;;  %v1195_v38 = vperm.slane %v1375_v37, 0 }
 0xf35   :  { %v1145_v6 = vmul.f32 %v1143_v53, %v1142_v4 }
 0xf37   :  { %v1148_v8 = vadd.f32 %v1146_v57, %v1145_v6 }
 0xf39   :  { %v1154_v1 = vsel %vm42_vm0, %v1148_v8, 0.0 }
 0xf3a   :  { %1155 = vadd.xlane.f32.xlu0 %v1154_v1 }
 0xfa5   :  { %v1153_v9 = vpop.xlane.xlu1 %1152 }
 0xfa6   :  { %v1157_v16 = vmul.f32 %v1153_v9, %v1732_v28 }
 0xfa8   :  { %v1159_v10 = vsub.f32 %v1147_v61, %v1157_v16 }
 0xfaa   :  { %v1161_v14 = vmul.f32 %v1159_v10, %v1159_v10 }
 0xfac   :  { %v1163_v18 = vsel %vm42_vm0, %v1161_v14, 0.0 }
 0xfad   :  { %v1156_v19 = vpop.xlane.xlu0 %1155  ;;  %1164 = vadd.xlane.f32.xlu2 %v1163_v18 }
 0xfae   :  { %v1158_v5 = vmul.f32 %v1156_v19, %v1732_v28 }
 0xfb0   :  { %v1160_v20 = vsub.f32 %v1148_v8, %v1158_v5 }
 0xfb2   :  { %v1162_v21 = vmul.f32 %v1160_v20, %v1160_v20 }
 0xfb4   :  { %v1166_v22 = vsel %vm42_vm0, %v1162_v21, 0.0 }
 0xfb5   :  { %1167 = vadd.xlane.f32.xlu1 %v1166_v22 }
0x1020   :  { %v1165_v24 = vpop.xlane.xlu2 %1164 }
0x1021   :  { %v1169_v25 = vmul.f32 %v1165_v24, %v1732_v28 }
0x1023   :  { %v1171_v15 = vadd.f32 1e-05, %v1169_v25 }
0x1025   :  { %1541 = vrsqrt.f32 %v1171_v15  ;;  %vm1179_vm15 = vweird.f32 %v1171_v15 }
0x1028   :  { %v1168_v26 = vpop.xlane.xlu1 %1167 }
0x1029   :  { %v1170_v2 = vmul.f32 %v1168_v26, %v1732_v28 }
0x102b   :  { %v1542_v29 = vpop.eup %1541  ;;  %v1172_v30 = vadd.f32 1e-05, %v1170_v2 }
0x102c   :  { %v1174_v31 = vmul.f32 %v1542_v29, %v1171_v15  ;;  %vm1180_vm14 = vweird.f32 %v1542_v29 }
0x102d   :  { %1543 = vrsqrt.f32 %v1172_v30  ;;  %vm1181_vm4 = vmor %vm1179_vm15, %vm1180_vm14  ;;  %vm1189_vm2 = vweird.f32 %v1172_v30 }
0x102e   :  { %v1175_v3 = vmul.f32 %v1542_v29, %v1174_v31 }
0x1030   :  { %v1176_v33 = vmul.f32 0.5, %v1175_v3 }
0x1032   :  { %v1177_v34 = vsub.f32 1.5, %v1176_v33 }
0x1033   :  { %v1544_v27 = vpop.eup %1543 }
0x1034   :  { %v1178_v35 = vmul.f32 %v1542_v29, %v1177_v34  ;;  %v1184_v11 = vmul.f32 %v1544_v27, %v1172_v30  ;;  %vm1190_vm1 = vweird.f32 %v1544_v27 }
0x1035   :  { %vm1191_vm3 = vmor %vm1189_vm2, %vm1190_vm1 }
0x1036   :  { %v1185_v36 = vmul.f32 %v1544_v27, %v1184_v11  ;;  %v1182_v32 = vsel %vm1181_vm4, %v1542_v29, %v1178_v35 }
0x1037   :  { %v1193_v39 = vmul.f32 %v1182_v32, %v1159_v10 }
0x1038   :  { %v1186_v28 = vmul.f32 0.5, %v1185_v36 }
0x1039   :  { %v1196_v43 = vmul.f32 %v1195_v38, %v1193_v39 }
0x103a   :  { %v1187_v12 = vsub.f32 1.5, %v1186_v28 }
0x103b   :  { %v1199_v45 = vadd.f32 %v1198_v42, %v1196_v43 }
0x103c   :  { %v1188_v40 = vmul.f32 %v1544_v27, %v1187_v12 }
0x103e   :  { %v1192_v41 = vsel %vm1191_vm3, %v1544_v27, %v1188_v40 }
0x103f   :  { %v1194_v44 = vmul.f32 %v1192_v41, %v1160_v20 }
0x1041   :  { %v1197_v13 = vmul.f32 %v1195_v38, %v1194_v44 }
0x1043   :  { %v1200_v46 = vadd.f32 %v1198_v42, %v1197_v13 }
0x1045   :  { %v1201_v48 = vpack.c.bf16 %v1200_v46, %v1199_v45 }
0x1047   :  { %1384 = vmatmul.msk.bf16.vlgmr.msra.gmra.mxu0 %vm42_vm0, %v1201_v48 }
0x10c4   :  { %v1231_v51 = vpop.f32.mrf.mxu0 }
0x10c5   :  { %v1232_v0 = vadd.f32 %v1231_v51, %v1206_v50 }
0x10c7   :  { %1236 = vst [vmem:[#allocation2] sm:$0xff] %v1232_v0 }
0x10cc   :  { %v1233_v49 = vpop.f32.mrf.mxu0 }
0x10cd   :  { %v1234_v52 = vadd.f32 %v1233_v49, %v1206_v50 }
0x10cf   :  { %1237 = vst [vmem:[#allocation2 + $0x8] sm:$0xff] %v1234_v52 }
0x10d0   :  { %1250 = dma.vmem_to_hbm [thread:$0]  %s1243_s8, 256, %s1245_s25, [#allocation3], %s1588_s26, %s1588_s26, %s1583_s13  }
0x10d1   :  { %1569 = dma.done.wait [#allocation3], 256  }
0x10d2   :  { %1570 = vsyncadd [#allocation3], 4294967040 }
0x10d3   :  { %1255 = vsyncpa [#allocation3], 1 }

</bundles_post_ra>
